<compile_context>
chip_gen: v6e
topology: v6e:2x2x1
jax: 0.10.0
libtpu: 0.0.40
codegen_flags: <defaults>
</compile_context>

<pallas_src>
import functools
import math

import jax
import jax.numpy as jnp
from jax.experimental import pallas as pl
from jax.experimental.pallas import tpu as pltpu

_LN_EPS = 1e-12


def _layernorm(z, gamma, beta, eps=_LN_EPS):
    mean = jnp.mean(z, axis=-1, keepdims=True)
    var = jnp.mean((z - mean) ** 2, axis=-1, keepdims=True)
    return (z - mean) * jax.lax.rsqrt(var + eps) * gamma + beta


def _gelu_exact(z):
    # HF BERT uses exact (erf-based) GELU.
    return 0.5 * z * (1.0 + jax.lax.erf(z * (1.0 / math.sqrt(2.0))))


def bert_layer_kernel(
    x_ref, mask_ref,
    wq_ref, bq_ref, wk_ref, bk_ref, wv_ref, bv_ref,
    wo_ref, bo_ref, g1_ref, be1_ref,
    wi_ref, bi_ref, wo2_ref, bo2_ref, g2_ref, be2_ref,
    out_ref,
    kT_scratch, v_scratch,
    *, num_heads, head_dim, q_block,
):
    qi = pl.program_id(1)
    S = x_ref.shape[1]
    H = num_heads * head_dim
    cdt = kT_scratch.dtype                     # bf16 compute dtype for the MXU

    # ---- K/V projections: once per batch element, cached in VMEM scratch ----
    @pl.when(qi == 0)
    def _():
        x_full = x_ref[0].astype(cdt)          # (S, H)
        k = jnp.dot(x_full, wk_ref[...], preferred_element_type=jnp.float32) + bk_ref[...]
        v = jnp.dot(x_full, wv_ref[...], preferred_element_type=jnp.float32) + bv_ref[...]
        # K stored pre-transposed as (nh, dh, S): the score einsum contracts
        # K's second-to-last dim, so no per-tile K relayout in the hot loop.
        kT_scratch[...] = (
            k.reshape(S, num_heads, head_dim).transpose(1, 2, 0).astype(cdt))
        v_scratch[...] = (
            v.reshape(S, num_heads, head_dim).transpose(1, 0, 2).astype(cdt))

    # ---- query tile ----
    q_start = pl.multiple_of(qi * q_block, q_block)
    x_tile = x_ref[0, pl.ds(q_start, q_block), :]        # (TQ, H) f32 (residual)
    x_cd = x_tile.astype(cdt)

    # 1/sqrt(head_dim) is already folded into wq/bq on the host.
    q = jnp.dot(x_cd, wq_ref[...], preferred_element_type=jnp.float32) + bq_ref[...]
    q = q.reshape(q_block, num_heads, head_dim).transpose(1, 0, 2).astype(cdt)

    # ---- scaled dot-product attention, all heads batched on the MXU ----
    s = jnp.einsum("nqd,ndk->nqk", q, kT_scratch[...],
                   preferred_element_type=jnp.float32)   # (nh, TQ, S) f32
    s = s + mask_ref[...]                                # (1, 1, S) additive mask
    s = s - jnp.max(s, axis=-1, keepdims=True)
    p = jnp.exp(s)
    denom = jnp.sum(p, axis=-1, keepdims=True)           # (nh, TQ, 1)
    ctx = jnp.einsum("nqk,nkd->nqd", p.astype(cdt), v_scratch[...],
                     preferred_element_type=jnp.float32)  # (nh, TQ, dh) f32
    # Deferred softmax normalization: scale the small context tensor instead of
    # the (nh, TQ, S) probabilities (~S/dh fewer VPU multiplies per tile).
    ctx = ctx * pl.reciprocal(denom, approx=True)
    ctx = ctx.transpose(1, 0, 2).reshape(q_block, H).astype(cdt)

    # ---- attention output dense + residual + LayerNorm ----
    attn = jnp.dot(ctx, wo_ref[...], preferred_element_type=jnp.float32) + bo_ref[...]
    h1 = _layernorm(attn + x_tile, g1_ref[...], be1_ref[...])

    # ---- FFN: intermediate dense + exact GELU -> output + residual + LN ----
    # TODO(synk): for TQ=256 on v7x (64 MiB VMEM), chunk the intermediate dim
    # (tile wi columns / wo2 rows with a (TQ, H) f32 accumulator).
    inter = _gelu_exact(
        jnp.dot(h1.astype(cdt), wi_ref[...], preferred_element_type=jnp.float32)
        + bi_ref[...])
    ffn = (jnp.dot(inter.astype(cdt), wo2_ref[...], preferred_element_type=jnp.float32)
           + bo2_ref[...])
    y = _layernorm(ffn + h1, g2_ref[...], be2_ref[...])

    out_ref[0] = y.astype(out_ref.dtype)


def _default_q_block(S):
    if S % 128 != 0:
        return S
    tq = 128
    try:
        info = str(pltpu.get_tpu_info()).lower()
        # v6e: 128 MiB VMEM + wide MXU -> TQ=256 halves weight-bytes per MAC.
        if "v6" in info and S % 256 == 0:
            tq = 256
    except Exception:  # AOT / mock compile: stay at the conservative default.
        pass
    return tq


def _vmem_limit_bytes(*, S, H, I, nh, q_block, cdt_bytes, out_bytes, x_bytes,
                      weight_buffers):
    """Explicit per-step VMEM budget (documents why the kernel fits)."""
    weights = (4 * H * H + 2 * H * I) * cdt_bytes * weight_buffers
    biases = (6 * H + I) * 4 * weight_buffers            # f32 biases + LN params
    x_blk = 2 * S * H * x_bytes                          # double-buffered input
    mask_blk = 2 * S * 4
    out_blk = 2 * q_block * H * out_bytes
    kv_scratch = 2 * S * H * cdt_bytes
    temps = (nh * q_block * S * 4                        # f32 scores
             + q_block * I * 4                           # f32 FFN intermediate
             + 4 * q_block * H * 4)                      # misc f32 tiles
    margin = 8 << 20                                     # Mosaic internal scratch
    budget = weights + biases + x_blk + mask_blk + out_blk + kv_scratch + temps + margin
    budget = max(budget, 32 << 20)
    try:
        cap = pltpu.get_tpu_info().vmem_capacity_bytes
        budget = min(budget, int(cap * 0.9))
    except Exception:  # unknown target: stay under v7x's 64 MiB physical VMEM
        budget = min(budget, 56 << 20)
    return int(budget)


def bert_encoder_layer(x, attention_mask, params, *, num_heads,
                       q_block=None, compute_dtype=jnp.bfloat16, out_dtype=None):
    B, S, H = x.shape
    I = params["wi"].shape[1]
    head_dim = H // num_heads
    out_dtype = x.dtype if out_dtype is None else out_dtype
    if q_block is None:
        q_block = _default_q_block(S)
    assert S % q_block == 0
    nq = S // q_block

    mask = attention_mask.reshape(B, 1, S).astype(jnp.float32)

    # Fold the attention scale into wq/bq in f32, then cast matmul weights to
    # the compute dtype once on the host (halves their VMEM footprint).
    wdt = compute_dtype
    scale = 1.0 / math.sqrt(head_dim)
    wq = (params["wq"] * scale).astype(wdt)
    bq = (params["bq"] * scale).astype(jnp.float32)
    wk, wv = params["wk"].astype(wdt), params["wv"].astype(wdt)
    wo, wi, wo2 = params["wo"].astype(wdt), params["wi"].astype(wdt), params["wo2"].astype(wdt)

    kern = functools.partial(bert_layer_kernel, num_heads=num_heads,
                             head_dim=head_dim, q_block=q_block)

    cdt_b = jnp.dtype(compute_dtype).itemsize
    out_b = jnp.dtype(out_dtype).itemsize
    x_b = jnp.dtype(x.dtype).itemsize

    cost = pl.CostEstimate(
        flops=int(8 * B * S * H * H + 4 * B * S * S * H + 4 * B * S * H * I),
        transcendentals=int(B * num_heads * S * S + B * S * I),
        bytes_accessed=int((4 * H * H + 2 * H * I) * cdt_b
                           + B * S * H * (x_b + out_b) + B * S * 4),
    )

    def build(weight_mode, weight_buffers):
        vmem_limit = _vmem_limit_bytes(
            S=S, H=H, I=I, nh=num_heads, q_block=q_block, cdt_bytes=cdt_b,
            out_bytes=out_b, x_bytes=x_b, weight_buffers=weight_buffers)

        def const(shape):
            if weight_mode is None:
                return pl.BlockSpec(shape, lambda b, qi: (0, 0))
            return pl.BlockSpec(shape, lambda b, qi: (0, 0),
                                pipeline_mode=weight_mode)

        in_specs = [
            pl.BlockSpec((1, S, H), lambda b, qi: (b, 0, 0)),   # x (full seq)
            pl.BlockSpec((1, 1, S), lambda b, qi: (b, 0, 0)),   # additive mask
            const((H, H)), const((1, H)),                       # wq, bq
            const((H, H)), const((1, H)),                       # wk, bk
            const((H, H)), const((1, H)),                       # wv, bv
            const((H, H)), const((1, H)),                       # wo, bo
            const((1, H)), const((1, H)),                       # ln1 gamma, beta
            const((H, I)), const((1, I)),                       # wi, bi
            const((I, H)), const((1, H)),                       # wo2, bo2
            const((1, H)), const((1, H)),                       # ln2 gamma, beta
        ]
        return pl.pallas_call(
            kern,
            out_shape=jax.ShapeDtypeStruct((B, S, H), out_dtype),
            grid_spec=pltpu.PrefetchScalarGridSpec(
                num_scalar_prefetch=0,
                grid=(B, nq),
                in_specs=in_specs,
                out_specs=pl.BlockSpec((1, q_block, H), lambda b, qi: (b, qi, 0)),
                scratch_shapes=[
                    pltpu.VMEM((num_heads, head_dim, S), compute_dtype),  # K^T
                    pltpu.VMEM((num_heads, S, head_dim), compute_dtype),  # V
                ]),
            compiler_params=pltpu.CompilerParams(
                dimension_semantics=("parallel", "arbitrary"),
                vmem_limit_bytes=vmem_limit),
            cost_estimate=cost,
        )

    args = (
        x, mask,
        wq, bq, wk, params["bk"], wv, params["bv"],
        wo, params["bo"], params["g1"], params["be1"],
        wi, params["bi"], wo2, params["bo2"], params["g2"], params["be2"],
    )

    # Grid-invariant weights only need one VMEM buffer. Probe pipeline_mode
    # support at BlockSpec construction time; at run time fall back only on a
    # Mosaic lowering failure (no blanket `except Exception`).
    weight_mode = None
    try:
        pl.BlockSpec((1, 128), lambda b, qi: (0, 0), pipeline_mode=pl.Buffered(1))
        weight_mode = pl.Buffered(1)
    except (AttributeError, TypeError, ValueError):
        weight_mode = None

    if weight_mode is None:
        return build(None, 2)(*args)
    try:
        return build(weight_mode, 1)(*args)
    except (pltpu.LoweringException, NotImplementedError, ValueError):
        # TODO(synk): on v7x (64 MiB VMEM) prefer shrinking q_block or DMAing
        # wi/wo2 via memory_space=pl.ANY instead of double-buffering weights.
        return build(None, 2)(*args)


def bert_encoder_layer_ref(x, attention_mask, params, *, num_heads,
                           compute_dtype=None):
    """Pure-JAX reference. compute_dtype=None -> full f32 module semantics;
    compute_dtype=jnp.bfloat16 mirrors the kernel's mixed-precision casts."""
    B, S, H = x.shape
    nh = num_heads
    dh = H // nh

    def cast(t):
        return t if compute_dtype is None else t.astype(compute_dtype)

    def mm(a, w):
        return jnp.dot(cast(a), cast(w), preferred_element_type=jnp.float32)

    q = mm(x, params["wq"]) + params["bq"]
    k = mm(x, params["wk"]) + params["bk"]
    v = mm(x, params["wv"]) + params["bv"]
    q = q * (1.0 / math.sqrt(dh))

    def split(t):
        return cast(t).reshape(B, S, nh, dh).transpose(0, 2, 1, 3)

    qh, kh, vh = split(q), split(k), split(v)
    s = jnp.einsum("bnqd,bnkd->bnqk", qh, kh, preferred_element_type=jnp.float32)
    s = s + attention_mask                              # (B,1,1,S) broadcast
    p = jax.nn.softmax(s, axis=-1)
    ctx = jnp.einsum("bnqk,bnkd->bnqd", cast(p), vh,
                     preferred_element_type=jnp.float32)
    ctx = ctx.transpose(0, 2, 1, 3).reshape(B, S, H)

    attn = mm(ctx, params["wo"]) + params["bo"]
    h1 = _layernorm(attn + x, params["g1"], params["be1"])
    inter = _gelu_exact(mm(h1, params["wi"]) + params["bi"])
    ffn = mm(inter, params["wo2"]) + params["bo2"]
    return _layernorm(ffn + h1, params["g2"], params["be2"])


def make_params(key, hidden, intermediate):
    ks = jax.random.split(key, 10)
    n = lambda k, shp: (0.02 * jax.random.normal(k, shp)).astype(jnp.float32)
    H, I = hidden, intermediate
    return {
        "wq": n(ks[0], (H, H)), "bq": n(ks[1], (1, H)),
        "wk": n(ks[2], (H, H)), "bk": n(ks[3], (1, H)),
        "wv": n(ks[4], (H, H)), "bv": n(ks[5], (1, H)),
        "wo": n(ks[6], (H, H)), "bo": n(ks[7], (1, H)),
        "g1": jnp.ones((1, H), jnp.float32), "be1": jnp.zeros((1, H), jnp.float32),
        "wi": n(ks[8], (H, I)), "bi": jnp.zeros((1, I), jnp.float32),
        "wo2": n(ks[9], (I, H)), "bo2": jnp.zeros((1, H), jnp.float32),
        "g2": jnp.ones((1, H), jnp.float32), "be2": jnp.zeros((1, H), jnp.float32),
    }


if __name__ == "__main__":
    B, S, H, NH, I = 2, 8, 32, 4, 128

    key = jax.random.PRNGKey(0)
    kx, kp = jax.random.split(key)
    x = jax.random.normal(kx, (B, S, H), dtype=jnp.float32)
    params = make_params(kp, H, I)

    # HuggingFace-style additive extended mask: 0 = attend, -10000 = masked.
    attention_mask = jnp.zeros((B, 1, 1, S), jnp.float32)
    attention_mask = attention_mask.at[1, :, :, 6:].set(-10000.0)

    out = bert_encoder_layer(x, attention_mask, params, num_heads=NH)
    out = jax.block_until_ready(out)
    assert out.shape == (B, S, H)

    # Check against a reference with the same bf16 matmul casts.
    ref_mp = bert_encoder_layer_ref(x, attention_mask, params, num_heads=NH,
                                    compute_dtype=jnp.bfloat16)
    err_mp = float(jnp.max(jnp.abs(out - ref_mp)))
    assert jnp.allclose(out, ref_mp, atol=1e-2, rtol=1e-2), err_mp

    # Loose check against the full-f32 module semantics.
    ref_f32 = bert_encoder_layer_ref(x, attention_mask, params, num_heads=NH)
    err_f32 = float(jnp.max(jnp.abs(out - ref_f32)))
    assert jnp.allclose(out, ref_f32, atol=5e-2, rtol=5e-2), err_f32

    print("KERNEL_OK")
</pallas_src>

<mosaic_0001>
module attributes {stable_mosaic.version = 11 : i64} {
  func.func @bert_layer_kernel(%arg0: i32, %arg1: i32, %arg2: memref<1x8x32xf32, #tpu.memory_space<vmem>>, %arg3: memref<1x1x8xf32, #tpu.memory_space<vmem>>, %arg4: memref<32x32xbf16, #tpu.memory_space<vmem>>, %arg5: memref<1x32xf32, #tpu.memory_space<vmem>>, %arg6: memref<32x32xbf16, #tpu.memory_space<vmem>>, %arg7: memref<1x32xf32, #tpu.memory_space<vmem>>, %arg8: memref<32x32xbf16, #tpu.memory_space<vmem>>, %arg9: memref<1x32xf32, #tpu.memory_space<vmem>>, %arg10: memref<32x32xbf16, #tpu.memory_space<vmem>>, %arg11: memref<1x32xf32, #tpu.memory_space<vmem>>, %arg12: memref<1x32xf32, #tpu.memory_space<vmem>>, %arg13: memref<1x32xf32, #tpu.memory_space<vmem>>, %arg14: memref<32x128xbf16, #tpu.memory_space<vmem>>, %arg15: memref<1x128xf32, #tpu.memory_space<vmem>>, %arg16: memref<128x32xbf16, #tpu.memory_space<vmem>>, %arg17: memref<1x32xf32, #tpu.memory_space<vmem>>, %arg18: memref<1x32xf32, #tpu.memory_space<vmem>>, %arg19: memref<1x32xf32, #tpu.memory_space<vmem>>, %arg20: memref<1x8x32xf32, #tpu.memory_space<vmem>>, %arg21: memref<4x8x8xbf16, #tpu.memory_space<vmem>>, %arg22: memref<4x8x8xbf16, #tpu.memory_space<vmem>>) attributes {dimension_semantics = [#tpu.dimension_semantics<parallel>, #tpu.dimension_semantics<arbitrary>], iteration_bounds = array<i64: 2, 1>, scalar_prefetch = 0 : i64, scratch_operands = 2 : i64, tpu.core_type = #tpu.core_type<tc>, window_params = [{transform_indices = @transform_0, window_bounds = array<i64: 1, 8, 32>}, {transform_indices = @transform_1, window_bounds = array<i64: 1, 1, 8>}, {pipeline_mode = #tpu.pipeline_mode<synchronous>, transform_indices = @transform_2, window_bounds = array<i64: 32, 32>}, {pipeline_mode = #tpu.pipeline_mode<synchronous>, transform_indices = @transform_3, window_bounds = array<i64: 1, 32>}, {pipeline_mode = #tpu.pipeline_mode<synchronous>, transform_indices = @transform_4, window_bounds = array<i64: 32, 32>}, {pipeline_mode = #tpu.pipeline_mode<synchronous>, transform_indices = @transform_5, window_bounds = array<i64: 1, 32>}, {pipeline_mode = #tpu.pipeline_mode<synchronous>, transform_indices = @transform_6, window_bounds = array<i64: 32, 32>}, {pipeline_mode = #tpu.pipeline_mode<synchronous>, transform_indices = @transform_7, window_bounds = array<i64: 1, 32>}, {pipeline_mode = #tpu.pipeline_mode<synchronous>, transform_indices = @transform_8, window_bounds = array<i64: 32, 32>}, {pipeline_mode = #tpu.pipeline_mode<synchronous>, transform_indices = @transform_9, window_bounds = array<i64: 1, 32>}, {pipeline_mode = #tpu.pipeline_mode<synchronous>, transform_indices = @transform_10, window_bounds = array<i64: 1, 32>}, {pipeline_mode = #tpu.pipeline_mode<synchronous>, transform_indices = @transform_11, window_bounds = array<i64: 1, 32>}, {pipeline_mode = #tpu.pipeline_mode<synchronous>, transform_indices = @transform_12, window_bounds = array<i64: 32, 128>}, {pipeline_mode = #tpu.pipeline_mode<synchronous>, transform_indices = @transform_13, window_bounds = array<i64: 1, 128>}, {pipeline_mode = #tpu.pipeline_mode<synchronous>, transform_indices = @transform_14, window_bounds = array<i64: 128, 32>}, {pipeline_mode = #tpu.pipeline_mode<synchronous>, transform_indices = @transform_15, window_bounds = array<i64: 1, 32>}, {pipeline_mode = #tpu.pipeline_mode<synchronous>, transform_indices = @transform_16, window_bounds = array<i64: 1, 32>}, {pipeline_mode = #tpu.pipeline_mode<synchronous>, transform_indices = @transform_17, window_bounds = array<i64: 1, 32>}, {transform_indices = @transform_18, window_bounds = array<i64: 1, 8, 32>}]} {
    %c0_i32 = arith.constant 0 : i32
    %0 = arith.cmpi eq, %arg1, %c0_i32 : i32
    %1 = arith.extui %0 : i1 to i32
    %c0_i32_0 = arith.constant 0 : i32
    %2 = arith.cmpi ne, %1, %c0_i32_0 : i32
    scf.if %2 {
      %c0_58 = arith.constant 0 : index
      %c0_59 = arith.constant 0 : index
      %c0_60 = arith.constant 0 : index
      %116 = vector.load %arg2[%c0_58, %c0_59, %c0_60] : memref<1x8x32xf32, #tpu.memory_space<vmem>>, vector<1x8x32xf32>
      %117 = vector.shape_cast %116 : vector<1x8x32xf32> to vector<8x32xf32>
      %118 = arith.truncf %117 : vector<8x32xf32> to vector<8x32xbf16>
      %c0_61 = arith.constant 0 : index
      %c0_62 = arith.constant 0 : index
      %119 = vector.load %arg6[%c0_61, %c0_62] : memref<32x32xbf16, #tpu.memory_space<vmem>>, vector<32x32xbf16>
      %cst_63 = arith.constant dense<0.000000e+00> : vector<8x32xf32>
      %120 = tpu.matmul %118, %119, %cst_63 {dimension_numbers = #tpu.dot_dimension_numbers<[1], [0], [0], [1], [0, 0, 1, 1], [], []>} : vector<8x32xbf16>, vector<32x32xbf16>, vector<8x32xf32> -> vector<8x32xf32>
      %c0_64 = arith.constant 0 : index
      %c0_65 = arith.constant 0 : index
      %121 = vector.load %arg7[%c0_64, %c0_65] : memref<1x32xf32, #tpu.memory_space<vmem>>, vector<1x32xf32>
      %122 = vector.broadcast %121 : vector<1x32xf32> to vector<8x32xf32>
      %123 = arith.addf %120, %122 : vector<8x32xf32>
      %c0_66 = arith.constant 0 : index
      %c0_67 = arith.constant 0 : index
      %124 = vector.load %arg8[%c0_66, %c0_67] : memref<32x32xbf16, #tpu.memory_space<vmem>>, vector<32x32xbf16>
      %cst_68 = arith.constant dense<0.000000e+00> : vector<8x32xf32>
      %125 = tpu.matmul %118, %124, %cst_68 {dimension_numbers = #tpu.dot_dimension_numbers<[1], [0], [0], [1], [0, 0, 1, 1], [], []>} : vector<8x32xbf16>, vector<32x32xbf16>, vector<8x32xf32> -> vector<8x32xf32>
      %c0_69 = arith.constant 0 : index
      %c0_70 = arith.constant 0 : index
      %126 = vector.load %arg9[%c0_69, %c0_70] : memref<1x32xf32, #tpu.memory_space<vmem>>, vector<1x32xf32>
      %127 = vector.broadcast %126 : vector<1x32xf32> to vector<8x32xf32>
      %128 = arith.addf %125, %127 : vector<8x32xf32>
      %129 = vector.shape_cast %123 : vector<8x32xf32> to vector<8x4x8xf32>
      %130 = tpu.transpose %129, [1, 2, 0] : vector<8x4x8xf32> -> vector<4x8x8xf32>
      %131 = arith.truncf %130 : vector<4x8x8xf32> to vector<4x8x8xbf16>
      %c0_71 = arith.constant 0 : index
      %c0_72 = arith.constant 0 : index
      %c0_73 = arith.constant 0 : index
      %132 = vector.load %arg21[%c0_71, %c0_72, %c0_73] : memref<4x8x8xbf16, #tpu.memory_space<vmem>>, vector<4x8x8xbf16>
      tpu.vector_store %arg21[%c0_71, %c0_72, %c0_73], %131 {strides = array<i32>} : memref<4x8x8xbf16, #tpu.memory_space<vmem>>, vector<4x8x8xbf16>,
      %133 = vector.shape_cast %128 : vector<8x32xf32> to vector<8x4x8xf32>
      %134 = tpu.transpose %133, [1, 0, 2] : vector<8x4x8xf32> -> vector<4x8x8xf32>
      %135 = arith.truncf %134 : vector<4x8x8xf32> to vector<4x8x8xbf16>
      %c0_74 = arith.constant 0 : index
      %c0_75 = arith.constant 0 : index
      %c0_76 = arith.constant 0 : index
      %136 = vector.load %arg22[%c0_74, %c0_75, %c0_76] : memref<4x8x8xbf16, #tpu.memory_space<vmem>>, vector<4x8x8xbf16>
      tpu.vector_store %arg22[%c0_74, %c0_75, %c0_76], %135 {strides = array<i32>} : memref<4x8x8xbf16, #tpu.memory_space<vmem>>, vector<4x8x8xbf16>,
    } else {
    }
    %c8_i32 = arith.constant 8 : i32
    %3 = arith.muli %arg1, %c8_i32 : i32
    %4 = tpu.assume_multiple %3, 8 : i32
    %c0 = arith.constant 0 : index
    %5 = arith.index_cast %4 : i32 to index
    %c0_1 = arith.constant 0 : index
    %6 = vector.load %arg2[%c0, %5, %c0_1] : memref<1x8x32xf32, #tpu.memory_space<vmem>>, vector<1x8x32xf32>
    %7 = vector.shape_cast %6 : vector<1x8x32xf32> to vector<8x32xf32>
    %8 = arith.truncf %7 : vector<8x32xf32> to vector<8x32xbf16>
    %c0_2 = arith.constant 0 : index
    %c0_3 = arith.constant 0 : index
    %9 = vector.load %arg4[%c0_2, %c0_3] : memref<32x32xbf16, #tpu.memory_space<vmem>>, vector<32x32xbf16>
    %cst = arith.constant dense<0.000000e+00> : vector<8x32xf32>
    %10 = tpu.matmul %8, %9, %cst {dimension_numbers = #tpu.dot_dimension_numbers<[1], [0], [0], [1], [0, 0, 1, 1], [], []>} : vector<8x32xbf16>, vector<32x32xbf16>, vector<8x32xf32> -> vector<8x32xf32>
    %c0_4 = arith.constant 0 : index
    %c0_5 = arith.constant 0 : index
    %11 = vector.load %arg5[%c0_4, %c0_5] : memref<1x32xf32, #tpu.memory_space<vmem>>, vector<1x32xf32>
    %12 = vector.broadcast %11 : vector<1x32xf32> to vector<8x32xf32>
    %13 = arith.addf %10, %12 : vector<8x32xf32>
    %14 = vector.shape_cast %13 : vector<8x32xf32> to vector<8x4x8xf32>
    %15 = tpu.transpose %14, [1, 0, 2] : vector<8x4x8xf32> -> vector<4x8x8xf32>
    %16 = arith.truncf %15 : vector<4x8x8xf32> to vector<4x8x8xbf16>
    %c0_6 = arith.constant 0 : index
    %c0_7 = arith.constant 0 : index
    %c0_8 = arith.constant 0 : index
    %17 = vector.load %arg21[%c0_6, %c0_7, %c0_8] : memref<4x8x8xbf16, #tpu.memory_space<vmem>>, vector<4x8x8xbf16>
    "tpu.trace_start"() <{level = 10 : i32, message = "nqd,ndk->nqk"}> : () -> ()
    %cst_9 = arith.constant dense<0.000000e+00> : vector<4x8x8xf32>
    %18 = tpu.matmul %16, %17, %cst_9 {dimension_numbers = #tpu.dot_dimension_numbers<[2], [1], [1], [2], [0, 0, 0, 1, 1, 2], [0], [0]>} : vector<4x8x8xbf16>, vector<4x8x8xbf16>, vector<4x8x8xf32> -> vector<4x8x8xf32>
    "tpu.trace_stop"() : () -> ()
    %c0_10 = arith.constant 0 : index
    %c0_11 = arith.constant 0 : index
    %c0_12 = arith.constant 0 : index
    %19 = vector.load %arg3[%c0_10, %c0_11, %c0_12] : memref<1x1x8xf32, #tpu.memory_space<vmem>>, vector<1x1x8xf32>
    %20 = vector.broadcast %19 : vector<1x1x8xf32> to vector<4x8x8xf32>
    %21 = arith.addf %18, %20 : vector<4x8x8xf32>
    %cst_13 = arith.constant dense<0xFF800000> : vector<4x8xf32>
    %22 = vector.multi_reduction <maximumf>, %21, %cst_13 [2] : vector<4x8x8xf32> to vector<4x8xf32>
    %23 = vector.shape_cast %22 : vector<4x8xf32> to vector<4x8x1xf32>
    %24 = vector.broadcast %23 : vector<4x8x1xf32> to vector<4x8x8xf32>
    %25 = arith.subf %21, %24 : vector<4x8x8xf32>
    %26 = math.exp %25 : vector<4x8x8xf32>
    %cst_14 = arith.constant dense<0.000000e+00> : vector<4x8xf32>
    %27 = vector.multi_reduction <add>, %26, %cst_14 [2] : vector<4x8x8xf32> to vector<4x8xf32>
    %28 = vector.shape_cast %27 : vector<4x8xf32> to vector<4x8x1xf32>
    %29 = arith.truncf %26 : vector<4x8x8xf32> to vector<4x8x8xbf16>
    %c0_15 = arith.constant 0 : index
    %c0_16 = arith.constant 0 : index
    %c0_17 = arith.constant 0 : index
    %30 = vector.load %arg22[%c0_15, %c0_16, %c0_17] : memref<4x8x8xbf16, #tpu.memory_space<vmem>>, vector<4x8x8xbf16>
    "tpu.trace_start"() <{level = 10 : i32, message = "nqk,nkd->nqd"}> : () -> ()
    %cst_18 = arith.constant dense<0.000000e+00> : vector<4x8x8xf32>
    %31 = tpu.matmul %29, %30, %cst_18 {dimension_numbers = #tpu.dot_dimension_numbers<[2], [1], [1], [2], [0, 0, 0, 1, 1, 2], [0], [0]>} : vector<4x8x8xbf16>, vector<4x8x8xbf16>, vector<4x8x8xf32> -> vector<4x8x8xf32>
    "tpu.trace_stop"() : () -> ()
    %32 = tpu.reciprocal %28 {approx = true} : vector<4x8x1xf32> -> vector<4x8x1xf32>
    %33 = vector.broadcast %32 : vector<4x8x1xf32> to vector<4x8x8xf32>
    %34 = arith.mulf %31, %33 : vector<4x8x8xf32>
    %35 = tpu.transpose %34, [1, 0, 2] : vector<4x8x8xf32> -> vector<8x4x8xf32>
    %36 = vector.shape_cast %35 : vector<8x4x8xf32> to vector<8x32xf32>
    %37 = arith.truncf %36 : vector<8x32xf32> to vector<8x32xbf16>
    %c0_19 = arith.constant 0 : index
    %c0_20 = arith.constant 0 : index
    %38 = vector.load %arg10[%c0_19, %c0_20] : memref<32x32xbf16, #tpu.memory_space<vmem>>, vector<32x32xbf16>
    %cst_21 = arith.constant dense<0.000000e+00> : vector<8x32xf32>
    %39 = tpu.matmul %37, %38, %cst_21 {dimension_numbers = #tpu.dot_dimension_numbers<[1], [0], [0], [1], [0, 0, 1, 1], [], []>} : vector<8x32xbf16>, vector<32x32xbf16>, vector<8x32xf32> -> vector<8x32xf32>
    %c0_22 = arith.constant 0 : index
    %c0_23 = arith.constant 0 : index
    %40 = vector.load %arg11[%c0_22, %c0_23] : memref<1x32xf32, #tpu.memory_space<vmem>>, vector<1x32xf32>
    %41 = vector.broadcast %40 : vector<1x32xf32> to vector<8x32xf32>
    %42 = arith.addf %39, %41 : vector<8x32xf32>
    %43 = arith.addf %42, %7 : vector<8x32xf32>
    %c0_24 = arith.constant 0 : index
    %c0_25 = arith.constant 0 : index
    %44 = vector.load %arg12[%c0_24, %c0_25] : memref<1x32xf32, #tpu.memory_space<vmem>>, vector<1x32xf32>
    %c0_26 = arith.constant 0 : index
    %c0_27 = arith.constant 0 : index
    %45 = vector.load %arg13[%c0_26, %c0_27] : memref<1x32xf32, #tpu.memory_space<vmem>>, vector<1x32xf32>
    %cst_28 = arith.constant dense<0.000000e+00> : vector<8xf32>
    %46 = vector.multi_reduction <add>, %43, %cst_28 [1] : vector<8x32xf32> to vector<8xf32>
    %47 = vector.shape_cast %46 : vector<8xf32> to vector<8x1xf32>
    %cst_29 = arith.constant 3.200000e+01 : f32
    %48 = vector.broadcast %cst_29 : f32 to vector<8x1xf32>
    %49 = arith.divf %47, %48 : vector<8x1xf32>
    %50 = vector.broadcast %49 : vector<8x1xf32> to vector<8x32xf32>
    %51 = arith.subf %43, %50 : vector<8x32xf32>
    %52 = arith.mulf %51, %51 : vector<8x32xf32>
    %cst_30 = arith.constant dense<0.000000e+00> : vector<8xf32>
    %53 = vector.multi_reduction <add>, %52, %cst_30 [1] : vector<8x32xf32> to vector<8xf32>
    %54 = vector.shape_cast %53 : vector<8xf32> to vector<8x1xf32>
    %cst_31 = arith.constant 3.200000e+01 : f32
    %55 = vector.broadcast %cst_31 : f32 to vector<8x1xf32>
    %56 = arith.divf %54, %55 : vector<8x1xf32>
    %57 = vector.broadcast %49 : vector<8x1xf32> to vector<8x32xf32>
    %58 = arith.subf %43, %57 : vector<8x32xf32>
    %cst_32 = arith.constant 9.99999996E-13 : f32
    %59 = vector.broadcast %cst_32 : f32 to vector<8x1xf32>
    %60 = arith.addf %56, %59 : vector<8x1xf32>
    %61 = math.rsqrt %60 : vector<8x1xf32>
    %62 = vector.broadcast %61 : vector<8x1xf32> to vector<8x32xf32>
    %63 = arith.mulf %58, %62 : vector<8x32xf32>
    %64 = vector.broadcast %44 : vector<1x32xf32> to vector<8x32xf32>
    %65 = arith.mulf %63, %64 : vector<8x32xf32>
    %66 = vector.broadcast %45 : vector<1x32xf32> to vector<8x32xf32>
    %67 = arith.addf %65, %66 : vector<8x32xf32>
    %68 = arith.truncf %67 : vector<8x32xf32> to vector<8x32xbf16>
    %c0_33 = arith.constant 0 : index
    %c0_34 = arith.constant 0 : index
    %69 = vector.load %arg14[%c0_33, %c0_34] : memref<32x128xbf16, #tpu.memory_space<vmem>>, vector<32x128xbf16>
    %cst_35 = arith.constant dense<0.000000e+00> : vector<8x128xf32>
    %70 = tpu.matmul %68, %69, %cst_35 {dimension_numbers = #tpu.dot_dimension_numbers<[1], [0], [0], [1], [0, 0, 1, 1], [], []>} : vector<8x32xbf16>, vector<32x128xbf16>, vector<8x128xf32> -> vector<8x128xf32>
    %c0_36 = arith.constant 0 : index
    %c0_37 = arith.constant 0 : index
    %71 = vector.load %arg15[%c0_36, %c0_37] : memref<1x128xf32, #tpu.memory_space<vmem>>, vector<1x128xf32>
    %72 = vector.broadcast %71 : vector<1x128xf32> to vector<8x128xf32>
    %73 = arith.addf %70, %72 : vector<8x128xf32>
    %cst_38 = arith.constant 5.000000e-01 : f32
    %74 = vector.broadcast %cst_38 : f32 to vector<8x128xf32>
    %75 = arith.mulf %74, %73 : vector<8x128xf32>
    %cst_39 = arith.constant 0.707106769 : f32
    %76 = vector.broadcast %cst_39 : f32 to vector<8x128xf32>
    %77 = arith.mulf %73, %76 : vector<8x128xf32>
    %78 = math.erf %77 : vector<8x128xf32>
    %cst_40 = arith.constant 1.000000e+00 : f32
    %79 = vector.broadcast %cst_40 : f32 to vector<8x128xf32>
    %80 = arith.addf %79, %78 : vector<8x128xf32>
    %81 = arith.mulf %75, %80 : vector<8x128xf32>
    %82 = arith.truncf %81 : vector<8x128xf32> to vector<8x128xbf16>
    %c0_41 = arith.constant 0 : index
    %c0_42 = arith.constant 0 : index
    %83 = vector.load %arg16[%c0_41, %c0_42] : memref<128x32xbf16, #tpu.memory_space<vmem>>, vector<128x32xbf16>
    %cst_43 = arith.constant dense<0.000000e+00> : vector<8x32xf32>
    %84 = tpu.matmul %82, %83, %cst_43 {dimension_numbers = #tpu.dot_dimension_numbers<[1], [0], [0], [1], [0, 0, 1, 1], [], []>} : vector<8x128xbf16>, vector<128x32xbf16>, vector<8x32xf32> -> vector<8x32xf32>
    %c0_44 = arith.constant 0 : index
    %c0_45 = arith.constant 0 : index
    %85 = vector.load %arg17[%c0_44, %c0_45] : memref<1x32xf32, #tpu.memory_space<vmem>>, vector<1x32xf32>
    %86 = vector.broadcast %85 : vector<1x32xf32> to vector<8x32xf32>
    %87 = arith.addf %84, %86 : vector<8x32xf32>
    %88 = arith.addf %87, %67 : vector<8x32xf32>
    %c0_46 = arith.constant 0 : index
    %c0_47 = arith.constant 0 : index
    %89 = vector.load %arg18[%c0_46, %c0_47] : memref<1x32xf32, #tpu.memory_space<vmem>>, vector<1x32xf32>
    %c0_48 = arith.constant 0 : index
    %c0_49 = arith.constant 0 : index
    %90 = vector.load %arg19[%c0_48, %c0_49] : memref<1x32xf32, #tpu.memory_space<vmem>>, vector<1x32xf32>
    %cst_50 = arith.constant dense<0.000000e+00> : vector<8xf32>
    %91 = vector.multi_reduction <add>, %88, %cst_50 [1] : vector<8x32xf32> to vector<8xf32>
    %92 = vector.shape_cast %91 : vector<8xf32> to vector<8x1xf32>
    %cst_51 = arith.constant 3.200000e+01 : f32
    %93 = vector.broadcast %cst_51 : f32 to vector<8x1xf32>
    %94 = arith.divf %92, %93 : vector<8x1xf32>
    %95 = vector.broadcast %94 : vector<8x1xf32> to vector<8x32xf32>
    %96 = arith.subf %88, %95 : vector<8x32xf32>
    %97 = arith.mulf %96, %96 : vector<8x32xf32>
    %cst_52 = arith.constant dense<0.000000e+00> : vector<8xf32>
    %98 = vector.multi_reduction <add>, %97, %cst_52 [1] : vector<8x32xf32> to vector<8xf32>
    %99 = vector.shape_cast %98 : vector<8xf32> to vector<8x1xf32>
    %cst_53 = arith.constant 3.200000e+01 : f32
    %100 = vector.broadcast %cst_53 : f32 to vector<8x1xf32>
    %101 = arith.divf %99, %100 : vector<8x1xf32>
    %102 = vector.broadcast %94 : vector<8x1xf32> to vector<8x32xf32>
    %103 = arith.subf %88, %102 : vector<8x32xf32>
    %cst_54 = arith.constant 9.99999996E-13 : f32
    %104 = vector.broadcast %cst_54 : f32 to vector<8x1xf32>
    %105 = arith.addf %101, %104 : vector<8x1xf32>
    %106 = math.rsqrt %105 : vector<8x1xf32>
    %107 = vector.broadcast %106 : vector<8x1xf32> to vector<8x32xf32>
    %108 = arith.mulf %103, %107 : vector<8x32xf32>
    %109 = vector.broadcast %89 : vector<1x32xf32> to vector<8x32xf32>
    %110 = arith.mulf %108, %109 : vector<8x32xf32>
    %111 = vector.broadcast %90 : vector<1x32xf32> to vector<8x32xf32>
    %112 = arith.addf %110, %111 : vector<8x32xf32>
    %c0_55 = arith.constant 0 : index
    %c0_56 = arith.constant 0 : index
    %c0_57 = arith.constant 0 : index
    %113 = vector.load %arg20[%c0_55, %c0_56, %c0_57] : memref<1x8x32xf32, #tpu.memory_space<vmem>>, vector<1x8x32xf32>
    %114 = vector.shape_cast %113 : vector<1x8x32xf32> to vector<8x32xf32>
    %115 = vector.shape_cast %112 : vector<8x32xf32> to vector<1x8x32xf32>
    tpu.vector_store %arg20[%c0_55, %c0_56, %c0_57], %115 {strides = array<i32>} : memref<1x8x32xf32, #tpu.memory_space<vmem>>, vector<1x8x32xf32>,
    return
  }
  func.func @transform_0(%arg0: i32, %arg1: i32) -> (i32, i32, i32) {
    %c0_i32 = arith.constant 0 : i32
    %c0_i32_0 = arith.constant 0 : i32
    %c0_i32_1 = arith.constant 0 : i32
    return %arg0, %c0_i32, %c0_i32_0 : i32, i32, i32
  }
  func.func @transform_1(%arg0: i32, %arg1: i32) -> (i32, i32, i32) {
    %c0_i32 = arith.constant 0 : i32
    %c0_i32_0 = arith.constant 0 : i32
    %c0_i32_1 = arith.constant 0 : i32
    return %arg0, %c0_i32, %c0_i32_0 : i32, i32, i32
  }
  func.func @transform_2(%arg0: i32, %arg1: i32) -> (i32, i32) {
    %c0_i32 = arith.constant 0 : i32
    %c0_i32_0 = arith.constant 0 : i32
    %c0_i32_1 = arith.constant 0 : i32
    return %c0_i32, %c0_i32_0 : i32, i32
  }
  func.func @transform_3(%arg0: i32, %arg1: i32) -> (i32, i32) {
    %c0_i32 = arith.constant 0 : i32
    %c0_i32_0 = arith.constant 0 : i32
    %c0_i32_1 = arith.constant 0 : i32
    return %c0_i32, %c0_i32_0 : i32, i32
  }
  func.func @transform_4(%arg0: i32, %arg1: i32) -> (i32, i32) {
    %c0_i32 = arith.constant 0 : i32
    %c0_i32_0 = arith.constant 0 : i32
    %c0_i32_1 = arith.constant 0 : i32
    return %c0_i32, %c0_i32_0 : i32, i32
  }
  func.func @transform_5(%arg0: i32, %arg1: i32) -> (i32, i32) {
    %c0_i32 = arith.constant 0 : i32
    %c0_i32_0 = arith.constant 0 : i32
    %c0_i32_1 = arith.constant 0 : i32
    return %c0_i32, %c0_i32_0 : i32, i32
  }
  func.func @transform_6(%arg0: i32, %arg1: i32) -> (i32, i32) {
    %c0_i32 = arith.constant 0 : i32
    %c0_i32_0 = arith.constant 0 : i32
    %c0_i32_1 = arith.constant 0 : i32
    return %c0_i32, %c0_i32_0 : i32, i32
  }
  func.func @transform_7(%arg0: i32, %arg1: i32) -> (i32, i32) {
    %c0_i32 = arith.constant 0 : i32
    %c0_i32_0 = arith.constant 0 : i32
    %c0_i32_1 = arith.constant 0 : i32
    return %c0_i32, %c0_i32_0 : i32, i32
  }
  func.func @transform_8(%arg0: i32, %arg1: i32) -> (i32, i32) {
    %c0_i32 = arith.constant 0 : i32
    %c0_i32_0 = arith.constant 0 : i32
    %c0_i32_1 = arith.constant 0 : i32
    return %c0_i32, %c0_i32_0 : i32, i32
  }
  func.func @transform_9(%arg0: i32, %arg1: i32) -> (i32, i32) {
    %c0_i32 = arith.constant 0 : i32
    %c0_i32_0 = arith.constant 0 : i32
    %c0_i32_1 = arith.constant 0 : i32
    return %c0_i32, %c0_i32_0 : i32, i32
  }
  func.func @transform_10(%arg0: i32, %arg1: i32) -> (i32, i32) {
    %c0_i32 = arith.constant 0 : i32
    %c0_i32_0 = arith.constant 0 : i32
    %c0_i32_1 = arith.constant 0 : i32
    return %c0_i32, %c0_i32_0 : i32, i32
  }
  func.func @transform_11(%arg0: i32, %arg1: i32) -> (i32, i32) {
    %c0_i32 = arith.constant 0 : i32
    %c0_i32_0 = arith.constant 0 : i32
    %c0_i32_1 = arith.constant 0 : i32
    return %c0_i32, %c0_i32_0 : i32, i32
  }
  func.func @transform_12(%arg0: i32, %arg1: i32) -> (i32, i32) {
    %c0_i32 = arith.constant 0 : i32
    %c0_i32_0 = arith.constant 0 : i32
    %c0_i32_1 = arith.constant 0 : i32
    return %c0_i32, %c0_i32_0 : i32, i32
  }
  func.func @transform_13(%arg0: i32, %arg1: i32) -> (i32, i32) {
    %c0_i32 = arith.constant 0 : i32
    %c0_i32_0 = arith.constant 0 : i32
    %c0_i32_1 = arith.constant 0 : i32
    return %c0_i32, %c0_i32_0 : i32, i32
  }
  func.func @transform_14(%arg0: i32, %arg1: i32) -> (i32, i32) {
    %c0_i32 = arith.constant 0 : i32
    %c0_i32_0 = arith.constant 0 : i32
    %c0_i32_1 = arith.constant 0 : i32
    return %c0_i32, %c0_i32_0 : i32, i32
  }
  func.func @transform_15(%arg0: i32, %arg1: i32) -> (i32, i32) {
    %c0_i32 = arith.constant 0 : i32
    %c0_i32_0 = arith.constant 0 : i32
    %c0_i32_1 = arith.constant 0 : i32
    return %c0_i32, %c0_i32_0 : i32, i32
  }
  func.func @transform_16(%arg0: i32, %arg1: i32) -> (i32, i32) {
    %c0_i32 = arith.constant 0 : i32
    %c0_i32_0 = arith.constant 0 : i32
    %c0_i32_1 = arith.constant 0 : i32
    return %c0_i32, %c0_i32_0 : i32, i32
  }
  func.func @transform_17(%arg0: i32, %arg1: i32) -> (i32, i32) {
    %c0_i32 = arith.constant 0 : i32
    %c0_i32_0 = arith.constant 0 : i32
    %c0_i32_1 = arith.constant 0 : i32
    return %c0_i32, %c0_i32_0 : i32, i32
  }
  func.func @transform_18(%arg0: i32, %arg1: i32) -> (i32, i32, i32) {
    %c0_i32 = arith.constant 0 : i32
    %c0_i32_0 = arith.constant 0 : i32
    return %arg0, %arg1, %c0_i32 : i32, i32, i32
  }
}

</mosaic_0001>

<bundles_post_ra>
// kernel: tpu_custom_call.1
= control target key start
LH: loop header
LB: loop body
LE: loop exit
PB: predicated region body
PF: predicated region fallthrough
CT: control target
= control target key end

     0   :  { %s4015_s0 = inlined_call_operand.vmem [shape: f32[2,8,32], index: 0, kind: input, shape index: {}]   ;;  %s4016_s1 = inlined_call_operand.hbm [shape: f32[2,1,8], index: 1, kind: input, shape index: {}]   ;;  %s4017_s2 = inlined_call_operand.vmem [shape: bf16[32,32], index: 2, kind: input, shape index: {}]   ;;  %s4018_s3 = inlined_call_operand.vmem [shape: f32[1,32], index: 3, kind: input, shape index: {}]   ;;  %s4019_s4 = inlined_call_operand.vmem [shape: bf16[32,32], index: 4, kind: input, shape index: {}]   ;;  %s4020_s5 = inlined_call_operand.vmem [shape: f32[1,32], index: 5, kind: input, shape index: {}]   ;;  %s4021_s6 = inlined_call_operand.vmem [shape: bf16[32,32], index: 6, kind: input, shape index: {}]   ;;  %s4022_s7 = inlined_call_operand.vmem [shape: f32[1,32], index: 7, kind: input, shape index: {}]   ;;  %s4023_s8 = inlined_call_operand.vmem [shape: bf16[32,32], index: 8, kind: input, shape index: {}]   ;;  %s4024_s9 = inlined_call_operand.vmem [shape: f32[1,32], index: 9, kind: input, shape index: {}]   ;;  %s4025_s10 = inlined_call_operand.vmem [shape: f32[1,32], index: 10, kind: input, shape index: {}]   ;;  %s4026_s11 = inlined_call_operand.vmem [shape: f32[1,32], index: 11, kind: input, shape index: {}]   ;;  %s4027_s12 = inlined_call_operand.hbm [shape: bf16[32,128], index: 12, kind: input, shape index: {}]   ;;  %s4028_s13 = inlined_call_operand.vmem [shape: f32[1,128], index: 13, kind: input, shape index: {}]   ;;  %s4029_s14 = inlined_call_operand.vmem [shape: bf16[128,32], index: 14, kind: input, shape index: {}]   ;;  %s4030_s15 = inlined_call_operand.vmem [shape: f32[1,32], index: 15, kind: input, shape index: {}]   ;;  %s4031_s16 = inlined_call_operand.vmem [shape: f32[1,32], index: 16, kind: input, shape index: {}]   ;;  %s4032_s17 = inlined_call_operand.vmem [shape: f32[1,32], index: 17, kind: input, shape index: {}]   ;;  %s4033_s18 = inlined_call_operand.hbm [shape: f32[2,8,32], index: 18, kind: output, shape index: {}]  }
   0x1   :  { %4042 = sst [smem:[#allocation17_spill]] %s4015_s0 }
   0x2   :  { %4043 = sst [smem:[#allocation18_spill]] %s4016_s1 }
   0x3   :  { %4044 = sst [smem:[#allocation19_spill]] %s4017_s2 }
   0x4   :  { %4045 = sst [smem:[#allocation20_spill]] %s4026_s11 }
   0x5   :  { %4046 = sst [smem:[#allocation21_spill]] %s4027_s12 }
   0x6   :  { %4047 = sst [smem:[#allocation22_spill]] %s4028_s13 }
   0x7   :  { %4048 = sst [smem:[#allocation23_spill]] %s4030_s15 }
   0x8   :  { %4049 = sst [smem:[#allocation24_spill]] %s4031_s16 }
   0x9   :  { %4050 = sst [smem:[#allocation25_spill]] %s4032_s17 }
   0xa   :  { %4051 = sst [smem:[#allocation26_spill]] %s4033_s18 }
   0xb   :  { %23 = vsyncpa [#allocation5], 0 }
   0xc   :  { %25 = vsyncpa [#allocation5 + $0x1], 0 }
   0xd   :  { %26 = vsyncpa [#allocation8], 0 }
   0xe   :  { %27 = vsyncpa [#allocation6], 0 }
   0xf   :  { %29 = vsyncpa [#allocation6 + $0x1], 0  ;;  %s3549_s27 = smov 0   ;;  %s3551_s28 = smov 0  }
  0x10   :  { %s3553_s29 = smov 0   ;;  %s3555_s30 = smov 0  }
  0x11   :  { %s3557_s0 = smov 0   ;;  %s3559_s19 = smov 0  }
  0x12 LB: > { %4052 = sst [smem:[#allocation13_spill]] %s3417_s27  ;;  %s2963_s1 = sadd.s32 4294967295, %s3437_s19   ;;  %s3437_s19 = sphi %s3559_s19, %s35_s19   ;;  %s3433_s0 = sphi %s3557_s0, %s4080_s0   ;;  %s3429_s30 = sphi %s3555_s30, %s4079_s30   ;;  %s3425_s29 = sphi %s3553_s29, %s4083_s29   ;;  %s3421_s28 = sphi %s3551_s28, %s4082_s28   ;;  %s3417_s27 = sphi %s3549_s27, %s4081_s27  }
  0x13   : > { %4053 = sst [smem:[#allocation14_spill]] %s3433_s0  ;;  %s2964_s20 = sadd.s32 4294967294, %s3437_s19  }
  0x14   : > { %p93_p0 = scmp.ne.s32.totalorder %s3421_s28, %s3417_s27  ;;  %p3583_p1 = scmp.eq.s32.totalorder %s2963_s1, 0 }
  0x15   : > { %p3587_p2 = scmp.eq.s32.totalorder %s2963_s1, 1  ;;  %p461_p3 = scmp.eq.s32.totalorder %s2964_s20, 1 }
  0x16   : > { %p3593_p4 = por %p3583_p1, %p93_p0  ;;  %p2965_p5 = scmp.ge.s32.totalorder %s3437_s19, 1 }
  0x17   : > { %p3598_p6 = por %p461_p3, %p93_p0  ;;  %p468_p7 = scmp.lt.s32.totalorder %s3437_s19, 3 }
  0x18   : > { %s4056_s2 = scalar_select %p3593_p4, 1, 0 }
  0x19   : > { %s4057_s23 = scalar_select %p3598_p6, 1, 0 }
  0x1a   : > { %p3603_p8 = pnand %p2965_p5, %p468_p7  ;;  %s3439_s25 = smov [#allocation7]  }
  0x1b   : > { %4058 = sst [smem:[#allocation15_spill]] %s4057_s23  ;;  %s510_s26 = sshll.u32 %s3439_s25, 4  ;;  %s511_s26 = int_to_ptr.vmem [resolvable:$true] %s510_s26 }
  0x1c   : > { %p3181_p9 = pneg %p3603_p8  ;;  %s47_s20 = sadd.s32 1, %s3433_s0 }
  0x1d   : > { %s3310_s23 = scalar_lea.vmem %s511_s26, 256  ;;  %p3318_p5 = scmp.lt.s32.totalorder %s511_s26, %s511_s26 }
  0x1e   : > { %p3612_p11 = pnand %p3181_p9, %p3583_p1  ;;  %p3311_p13 = scmp.ne.s32.totalorder %s511_s26, %s3310_s23 }
  0x1f   : > { %p3319_p7 = scmp.lt.s32.totalorder %s3310_s23, %s3310_s23 }
  0x20   : > { %p3301_p12 = pneg %p3612_p11 }
  0x21   : > { %p3320_p6 = por %p3319_p7, %p3318_p5 }
  0x22   : > { %p3313_p0 = pnand %p3311_p13, %p3301_p12 }
  0x24   : > { %p3314_p3 = pneg %p3313_p0 }
  0x26   : > { %p3321_p4 = pnand %p3320_p6, %p3314_p3 }
  0x28   : > { %3324 = shalt.err (!%p3321_p4)
}
  0x29   : > { %s3440_s25 = smov 64   ;;  %s3441_s27 = smov 4  }
  0x2a   : > { %s4061_s12 = sld [smem:[#allocation21_spill]]  ;;  %p49_p6 = scmp.ge.s32.totalorder %s47_s20, 2 }
  0x2b   : > { %p87_p4 = scmp.ne.s32.totalorder %s3425_s29, %s3421_s28  ;;  %p88_p9 = scmp.eq.s32.totalorder %s3437_s19, 0 }
  0x2c   : > { %s4085_s20 = smov (%p49_p6, %s47_s20), 0  ;;  %s80_s23 = sadd.s32 1, %s3425_s29 }
  0x2d   : > { %4062 = sst [smem:[#allocation16_spill]] %s4085_s20  ;;  %p3632_p12 = por %p3587_p2, %p87_p4 }
  0x2e   : > { %s77_s15 = ssub.s32 %s3433_s0, %s4085_s20  ;;  %p89_p13 = por %p88_p9, %p87_p4 }
  0x2f   : > { %p78_p0 = scmp.eq.s32.totalorder %s77_s15, 0  ;;  %s546_s1 = sand.u32 1, %s3425_s29  }
  0x30   : > { %3184 = dma.hbm_to_vmem [thread:$0]  (!%p3612_p11), %s4061_s12, 256, %s511_s26, [#allocation8], %s3440_s25, %s3440_s25, %s3441_s27  }
  0x31   : > { %p3194_p3 = scmp.lt.s32.totalorder %s3437_s19, 2  ;;  %s2968_s17 = sshll.u32 %s3433_s0, 4 }
  0x32   : > { %s3641_s13 = scalar_select %p78_p0, %s3425_s29, %s80_s23  }
  0x33   : > { %s549_s18 = scalar_lea.vmem [#allocation4], %s546_s1  ;;  %s4064_s12 = sld [smem:[#allocation18_spill]] }
  0x34   : > { %s556_s27 = sshll.u32 %s549_s18, 4  ;;  %p3647_p11 = pnand %p3194_p3, %p89_p13  ;;  %s557_s27 = int_to_ptr.vmem [resolvable:$true] %s556_s27 }
  0x35   : > { %s547_s20 = scalar_lea.sflag [#allocation5], %s546_s1  ;;  %s3338_s15 = scalar_lea.vmem %s557_s27, 16 }
  0x36   : > { %p3327_p2 = pneg %p3647_p11  ;;  %p3339_p5 = scmp.ne.s32.totalorder %s557_s27, %s3338_s15 }
  0x37   : > { %s3442_s23 = smov [#allocation4]  }
  0x38   : > { %p3341_p7 = pnand %p3339_p5, %p3327_p2  ;;  %s3343_s0 = sshll.u32 %s3442_s23, 4  ;;  %s3344_s0 = int_to_ptr.vmem [resolvable:$false] %s3343_s0 }
  0x39   : > { %s554_s11 = scalar_lea.hbm %s4064_s12, %s2968_s17  ;;  %s3345_s18 = scalar_lea.vmem %s3344_s0, 32 }
  0x3a   : > { %p3342_p6 = pneg %p3341_p7  ;;  %p3346_p4 = scmp.lt.s32.totalorder %s557_s27, %s3344_s0 }
  0x3b   : > { %p3347_p9 = scmp.lt.s32.totalorder %s3345_s18, %s3338_s15 }
  0x3d   : > { %p3348_p0 = por %p3347_p9, %p3346_p4 }
  0x3f   : > { %p3349_p10 = pnand %p3348_p0, %p3342_p6 }
  0x41   : > { %3352 = shalt.err (!%p3349_p10)
}
  0x42   : > { %3188 = dma.hbm_to_vmem [thread:$0]  (!%p3647_p11), %s554_s11, 16, %s557_s27, %s547_s20  }
  0x43   : > { %565 = sbr.rel (%p3603_p8) target bundleno = 2659 (0xa63), region = 92  ;;  %s3658_s12 = sand.u32 (!%p3603_p8), 1, %s3421_s28  }
  0x44   : > { %s568_s1 = scalar_lea.sflag (!%p3603_p8), [#allocation5], %s3658_s12  ;;  %s570_s17 = scalar_lea.vmem (!%p3603_p8), [#allocation4], %s3658_s12 }
  0x45   : > { %p4066_p13 = scmp.ne.s32.totalorder (!%p3603_p8), %s4056_s2, 0 }
  0x48   : > { %3404 = dma.done.wait (%p4066_p13), %s568_s1, 16  }
  0x49   : > { %3406 = vsyncadd (%p4066_p13), %s568_s1, 4294967280 }
  0x4a   : > { %3408 = dma.done.wait (%p3583_p1), [#allocation8], 256  }
  0x4b   : > { %3410 = vsyncadd (%p3583_p1), [#allocation8], 4294967040  ;;  %p630_p8 = scmp.lt.s32.totalorder %s3429_s30, 1  ;;  %v3443_v0 = vmov 0.0   ;;  %vm3444_vm0 = vmmov 0   ;;  %s4067_s24 = sld [smem:[#allocation17_spill]]  ;;  %v786_v27 = vlaneseq }
  0x4c   : > { %3065 = vmatprep.subr.bf16.mxu0 %v3443_v0  ;;  %3069 = vmatprep.mubr.msk.bf16.mxu0 %vm3444_vm0, %v3443_v0  ;;  %v3258_v1 = vld [vmem:[%s4019_s4 + $0x8] sm:$0xff]   ;;  %v3259_v2 = vld [vmem:[%s4019_s4] sm:$0xff]   ;;  %vm664_vm1 = vcmask 261120   ;;  %s4068_s2 = sld [smem:[#allocation19_spill]]  ;;  %s3445_s25 = smov 104   ;;  %vm1569_vm2 = vcmask 60416  }
  0x4d   : > { %s631_s11 = scalar_select %p630_p8, %s3429_s30, 1  ;;  %3089 = vmatprep.subr.bf16.mxu1 %v3443_v0  ;;  %3091 = vmatprep.mubr.msk.bf16.mxu1 %vm3444_vm0, %v3443_v0  ;;  %v3260_v5 = vld [vmem:[%s4021_s6 + $0x8] sm:$0xff]   ;;  %v3261_v6 = vld [vmem:[%s4021_s6] sm:$0xff]   ;;  %v3448_v25 = vmov 1983009808   ;;  %v787_v29 = vshrl.u32 %v786_v27, 7 }
  0x4e   : > { %3066 = vmatpush3.bf16.msra.mxu0 %v3258_v1  ;;  %v2973_v9 = vld [vmem:[%s4020_s5] ss:$0 sm:$0xff]  ;;  %s3446_s22 = smov 120   ;;  %s3447_s15 = smov 112   ;;  %v784_v26 = vunpack.c.l.s4 %v3448_v25  ;;  %v3449_v30 = vmov 1934713408  }
  0x4f   : > { %s2972_s0 = sshll.u32 %s631_s11, 3  ;;  %3067 = vmatprep.subr.bf16.mxu0 %v3443_v0  ;;  %v2983_v19 = vld [vmem:[%s4018_s3] ss:$0 sm:$0xff]  ;;  %v816_v31 = vunpack.c.l.s4 %v3449_v30  ;;  %vm1964_vm3 = vcmask 1043456   ;;  %vm1960_vm4 = vcmask 64512   ;;  %s3450_s27 = smov 16  }
  0x50   : > { %v785_v28 = vunpack.c.0.s8 %v784_v26  ;;  %s3451_s26 = smov 8   ;;  %vm2531_vm5 = vcmask 130048   ;;  %vm2533_vm6 = vcmask 195584   ;;  %s4072_s18 = sld [smem:[#allocation24_spill]] }
  0x51   : > { %s3681_s20 = scalar_lea.vmem %s4067_s24, %s2972_s0  ;;  %v817_v36 = vunpack.c.0.s8 %v816_v31  ;;  %s4069_s24 = sld [smem:[#allocation20_spill]] }
  0x52   : > { %v639_v3 = vld [vmem:[%s3681_s20] sm:$0xff]  ;;  %3068 = vmatpush3.bf16.msra.mxu0 %v3259_v2  ;;  %v3262_v7 = vld [vmem:[%s4068_s2 + $0x8] sm:$0xff]   ;;  %v3732_v34 = vsub.s32 %v785_v28, %v787_v29  ;;  %s3022_s0 = sshll.u32 %s3429_s30, 7  ;;  %s3453_s23 = smov [#allocation9]  }
  0x53   : > { %v640_v4 = vpack.c.bf16 %v639_v3, %v639_v3  ;;  %3073 = vmatprep.subr.bf16.mxu0 %v3443_v0  ;;  %v3263_v8 = vld [vmem:[%s4068_s2] sm:$0xff]   ;;  %v3737_v44 = vsub.s32 %v817_v36, %v787_v29  ;;  %s2849_s2 = scalar_lea.sflag [#allocation6], %s3658_s12 }
  0x55   : > { %3070 = vmatmul.mubr.msk.bf16.vlgmr.msra.gmra.mxu0 %vm664_vm1, %v640_v4 }
  0x56   : > { %3074 = vmatpush3.bf16.msra.mxu0 %v3260_v5  ;;  %3077 = vmatprep.mubr.msk.bf16.mxu0 %vm3444_vm0, %v3443_v0 }
  0x57   : > { %3075 = vmatprep.subr.bf16.mxu0 %v3443_v0 }
  0x5a   : > { %3076 = vmatpush3.bf16.msra.mxu0 %v3261_v6 }
  0x5b   : > { %3081 = vmatprep.subr.bf16.mxu0 %v3443_v0 }
  0x5d   : > { %3078 = vmatmul.mubr.msk.bf16.vlgmr.msra.gmra.mxu0 %vm664_vm1, %v640_v4 }
  0x5e   : > { %3082 = vmatpush3.bf16.msra.mxu0 %v3262_v7  ;;  %3085 = vmatprep.mubr.msk.bf16.mxu0 %vm3444_vm0, %v3443_v0 }
  0x5f   : > { %3083 = vmatprep.subr.bf16.mxu0 %v3443_v0 }
  0x62   : > { %3084 = vmatpush3.bf16.msra.mxu0 %v3263_v8 }
  0x63   : > { %3095 = vmatprep.subr.bf16.mxu0 %v3443_v0 }
  0x65   : > { %3086 = vmatmul.mubr.msk.bf16.vlgmr.msra.gmra.mxu0 %vm664_vm1, %v640_v4 }
  0x66   : > { %3097 = vmatprep.mubr.msk.bf16.mxu0 %vm3444_vm0, %v3443_v0 }
 0x115   : > { %v702_v10 = vpop.f32.mrf.mxu0 }
 0x116   : > { %v703_v11 = vadd.f32 %v2973_v9, %v702_v10 }
 0x117   : > { %v3071_v12 = vpop.f32.mrf.mxu0 }
 0x118   : > { %778 = vrot.lane.b32.xlu1 %v703_v11, %s3445_s25  ;;  %772 = vrot.lane.b32.xlu0 %v703_v11, %s3446_s22 }
 0x119   : > { %v705_v13 = vpop.f32.mrf.mxu0 }
 0x11b   : > { %v3072_v14 = vpop.f32.mrf.mxu0 }
 0x11c   : > { %775 = vrot.lane.b32.xlu0 %v703_v11, %s3447_s15 }
 0x11d   : > { %v3723_v15 = vpop.f32.mrf.mxu0 }
 0x11f   : > { %v3079_v16 = vpop.f32.mrf.mxu0 }
 0x121   : > { %v768_v17 = vpop.f32.mrf.mxu0 }
 0x123   : > { %v3080_v18 = vpop.f32.mrf.mxu0 }
 0x125   : > { %v1793_v20 = vpop.f32.mrf.mxu0 }
 0x126   : > { %v3728_v21 = vadd.f32 %v2983_v19, %v1793_v20 }
 0x127   : > { %v3087_v22 = vpop.f32.mrf.mxu0 }
 0x128   : > { %1800 = vrot.lane.b32.xlu1 %v3728_v21, %s3446_s22 }
 0x129   : > { %v1796_v23 = vpop.f32.mrf.mxu0 }
 0x12b   : > { %v3088_v24 = vpop.f32.mrf.mxu0 }
 0x18a   : > { %v779_v32 = vpop.permute.xlu1 %778  ;;  %v773_v33 = vpop.permute.xlu0 %772 }
 0x18b   : > { %v797_v35 = vcombine.low %v773_v33, %v779_v32  ;;  %v798_v38 = vcombine.high %v773_v33, %v779_v32 }
 0x18d   : > { %v805_v41 = vrot.slane %v797_v35, %v3732_v34  ;;  %v812_v45 = vrot.slane %v798_v38, %v3732_v34 }
 0x18e   : > { %v776_v37 = vpop.permute.xlu0 %775 }
 0x18f   : > { %v781_v39 = vcombine.low %v703_v11, %v776_v37  ;;  %v782_v40 = vcombine.high %v703_v11, %v776_v37 }
 0x191   : > { %v789_v42 = vrot.slane %v781_v39, %v3732_v34  ;;  %v796_v43 = vrot.slane %v782_v40, %v3732_v34 }
 0x193   : > { %v814_v46 = vcombine.high %v789_v42, %v805_v41  ;;  %v813_v47 = vcombine.low %v789_v42, %v805_v41  ;;  %v829_v50 = vcombine.low %v796_v43, %v812_v45  ;;  %v830_v53 = vcombine.high %v796_v43, %v812_v45 }
 0x195   : > { %v828_v48 = vrot.slane %v814_v46, %v3737_v44  ;;  %v821_v49 = vrot.slane %v813_v47, %v3737_v44  ;;  %v837_v52 = vrot.slane %v829_v50, %v3737_v44  ;;  %v844_v55 = vrot.slane %v830_v53, %v3737_v44 }
 0x197   : > { %913 = vxpose.xlu0.b32.start.end [1/1] (short) (narrow) %v828_v48, 8  ;;  %849 = vxpose.xlu1.b32.start.end [1/1] (short) (narrow) %v821_v49, 8  ;;  %v845_v51 = vcombine.high %v821_v49, %v3443_v0  ;;  %v846_v54 = vcombine.high %v828_v48, %v3443_v0  ;;  %v847_v56 = vcombine.high %v837_v52, %v3443_v0  ;;  %v2977_v48 = vld [vmem:[%s4022_s7] ss:$0 sm:$0xff] }
 0x198   : > { %v848_v57 = vcombine.high %v844_v55, %v3443_v0  ;;  %v3774_v49 = vadd.f32 %v2977_v48, %v3723_v15 }
 0x19a   : > { %v3752_v58 = vpop.permute.xlu1 %1800 }
 0x19b   : > { %881 = vxpose.xlu0.b32.start.end [1/1] (short) (narrow) %v845_v51, 8  ;;  %977 = vxpose.xlu1.b32.start.end [1/1] (short) (narrow) %v837_v52, 8 }
 0x19f   : > { %945 = vxpose.xlu0.b32.start.end [1/1] (short) (narrow) %v846_v54, 8  ;;  %1041 = vxpose.xlu1.b32.start.end [1/1] (short) (narrow) %v844_v55, 8 }
 0x1a3   : > { %1009 = vxpose.xlu0.b32.start.end [1/1] (short) (narrow) %v847_v56, 8 }
 0x1a7   : > { %1073 = vxpose.xlu0.b32.start.end [1/1] (short) (narrow) %v848_v57, 8 }
 0x1bd   : > { %1806 = vrot.lane.b32.xlu1 %v3728_v21, %s3445_s25 }
 0x1d0   : > { %1803 = vrot.lane.b32.xlu0 %v3728_v21, %s3447_s15 }
 0x213   : > { %v929_v59 = vpop.trf.xlu0  ;;  %v865_v60 = vpop.trf.xlu1 }
 0x214   : > { %v1105_v4 = vcombine.low %v865_v60, %v929_v59  ;;  %v1106_v17 = vcombine.high %v865_v60, %v929_v59 }
 0x216   : > { %v1113_v8 = vrot.slane %v1105_v4, %v3732_v34  ;;  %v1120_v27 = vrot.slane %v1106_v17, %v3732_v34 }
 0x217   : > { %v897_v61 = vpop.trf.xlu0  ;;  %v993_v62 = vpop.trf.xlu1 }
 0x21b   : > { %v961_v63 = vpop.trf.xlu0  ;;  %v1057_v3 = vpop.trf.xlu1 }
 0x21c   : > { %v1121_v1 = vcombine.low %v897_v61, %v961_v63  ;;  %v1137_v6 = vcombine.low %v993_v62, %v1057_v3  ;;  %v1122_v11 = vcombine.high %v897_v61, %v961_v63  ;;  %v1138_v13 = vcombine.high %v993_v62, %v1057_v3 }
 0x21e   : > { %v1129_v5 = vrot.slane %v1121_v1, %v3732_v34  ;;  %v1145_v14 = vrot.slane %v1137_v6, %v3732_v34  ;;  %v1136_v22 = vrot.slane %v1122_v11, %v3732_v34  ;;  %v1152_v23 = vrot.slane %v1138_v13, %v3732_v34 }
 0x21f   : > { %v1025_v2 = vpop.trf.xlu0 }
 0x220   : > { %v1169_v12 = vcombine.low %v1113_v8, %v1129_v5  ;;  %v1170_v26 = vcombine.high %v1113_v8, %v1129_v5  ;;  %v1185_v33 = vcombine.low %v1120_v27, %v1136_v22  ;;  %v1186_v40 = vcombine.high %v1120_v27, %v1136_v22 }
 0x222   : > { %v1177_v24 = vrot.slane %v1169_v12, %v3737_v44  ;;  %v1184_v32 = vrot.slane %v1170_v26, %v3737_v44  ;;  %v1193_v39 = vrot.slane %v1185_v33, %v3737_v44  ;;  %v1200_v45 = vrot.slane %v1186_v40, %v3737_v44 }
 0x223   : > { %v1089_v7 = vpop.trf.xlu0 }
 0x224   : > { %v1153_v9 = vcombine.low %v1025_v2, %v1089_v7  ;;  %v1154_v10 = vcombine.high %v1025_v2, %v1089_v7 }
 0x226   : > { %v1161_v16 = vrot.slane %v1153_v9, %v3732_v34  ;;  %v1168_v18 = vrot.slane %v1154_v10, %v3732_v34 }
 0x228   : > { %v1201_v19 = vcombine.low %v1145_v14, %v1161_v16  ;;  %v1202_v20 = vcombine.high %v1145_v14, %v1161_v16  ;;  %v1217_v31 = vcombine.low %v1152_v23, %v1168_v18  ;;  %v1218_v38 = vcombine.high %v1152_v23, %v1168_v18 }
 0x22a   : > { %v1209_v25 = vrot.slane %v1201_v19, %v3737_v44  ;;  %v1216_v30 = vrot.slane %v1202_v20, %v3737_v44  ;;  %v1225_v37 = vrot.slane %v1217_v31, %v3737_v44  ;;  %v1232_v43 = vrot.slane %v1218_v38, %v3737_v44 }
 0x22c   : > { %v1234_v28 = vcombine.high %v1177_v24, %v1209_v25  ;;  %v1233_v29 = vcombine.low %v1177_v24, %v1209_v25  ;;  %v1235_v35 = vcombine.low %v1184_v32, %v1216_v30  ;;  %v1236_v36 = vcombine.high %v1184_v32, %v1216_v30 }
 0x22d   : > { %v1237_v41 = vcombine.low %v1193_v39, %v1225_v37  ;;  %v1238_v42 = vcombine.high %v1193_v39, %v1225_v37  ;;  %v1239_v46 = vcombine.low %v1200_v45, %v1232_v43  ;;  %v1240_v47 = vcombine.high %v1200_v45, %v1232_v43 }
 0x22e   : > { %1273 = vxpose.xlu0.b32.start.end [1/1] (short) (narrow) %v1234_v28, 8  ;;  %1241 = vxpose.xlu1.b32.start.end [1/1] (short) (narrow) %v1233_v29, 8 }
 0x22f   : > { %v1807_v51 = vpop.permute.xlu1 %1806 }
 0x230   : > { %v1825_v54 = vcombine.low %v3752_v58, %v1807_v51  ;;  %v1826_v15 = vcombine.high %v3752_v58, %v1807_v51 }
 0x232   : > { %1305 = vxpose.xlu0.b32.start.end [1/1] (short) (narrow) %v1235_v35, 8  ;;  %1337 = vxpose.xlu1.b32.start.end [1/1] (short) (narrow) %v1236_v36, 8  ;;  %v1833_v60 = vrot.slane %v1825_v54, %v3732_v34  ;;  %v1840_v61 = vrot.slane %v1826_v15, %v3732_v34 }
 0x236   : > { %1369 = vxpose.xlu0.b32.start.end [1/1] (short) (narrow) %v1237_v41, 8  ;;  %1401 = vxpose.xlu1.b32.start.end [1/1] (short) (narrow) %v1238_v42, 8 }
 0x23a   : > { %1433 = vxpose.xlu0.b32.start.end [1/1] (short) (narrow) %v1239_v46, 8  ;;  %1465 = vxpose.xlu1.b32.start.end [1/1] (short) (narrow) %v1240_v47, 8 }
 0x242   : > { %v1804_v50 = vpop.permute.xlu0 %1803 }
 0x243   : > { %v1809_v52 = vcombine.low %v3728_v21, %v1804_v50  ;;  %v1810_v53 = vcombine.high %v3728_v21, %v1804_v50 }
 0x245   : > { %v1817_v57 = vrot.slane %v1809_v52, %v3732_v34  ;;  %v1824_v59 = vrot.slane %v1810_v53, %v3732_v34 }
 0x247   : > { %v1841_v1 = vcombine.low %v1817_v57, %v1833_v60  ;;  %v1842_v2 = vcombine.high %v1817_v57, %v1833_v60  ;;  %v1857_v3 = vcombine.low %v1824_v59, %v1840_v61  ;;  %v1858_v21 = vcombine.high %v1824_v59, %v1840_v61 }
 0x249   : > { %v1849_v7 = vrot.slane %v1841_v1, %v3737_v44  ;;  %v1856_v8 = vrot.slane %v1842_v2, %v3737_v44  ;;  %v1865_v9 = vrot.slane %v1857_v3, %v3737_v44  ;;  %v1872_v10 = vrot.slane %v1858_v21, %v3737_v44 }
 0x24b   : > { %v1877_v18 = vcombine.low %v1849_v7, %v1856_v8  ;;  %v2987_v19 = vcombine.high %v1849_v7, %v1856_v8  ;;  %v1893_v20 = vcombine.low %v1865_v9, %v1872_v10  ;;  %v2988_v22 = vcombine.high %v1865_v9, %v1872_v10 }
 0x24d   : > { %v1884_v29 = vrot.slane %v1877_v18, %v3732_v34  ;;  %v1892_v30 = vrot.slane %v2987_v19, %v3732_v34  ;;  %v1900_v31 = vrot.slane %v1893_v20, %v3732_v34  ;;  %v1908_v32 = vrot.slane %v2988_v22, %v3732_v34 }
 0x24f   : > { %v1909_v42 = vcombine.low %v1884_v29, %v1892_v30  ;;  %v1925_v43 = vcombine.low %v1900_v31, %v1908_v32  ;;  %v1910_v52 = vcombine.high %v1884_v29, %v1892_v30  ;;  %v1926_v53 = vcombine.high %v1900_v31, %v1908_v32 }
 0x251   : > { %v1917_v50 = vrot.slane %v1909_v42, %v3737_v44  ;;  %v1933_v51 = vrot.slane %v1925_v43, %v3737_v44  ;;  %v1940_v2 = vrot.slane %v1926_v53, %v3737_v44 }
 0x253   : > { %v1941_v54 = vcombine.low %v1917_v50, %v1933_v51  ;;  %v1942_v15 = vcombine.high %v1917_v50, %v1933_v51 }
 0x255   : > { %v1946_v1 = vpack.c.bf16 %v1942_v15, %v1942_v15 }
 0x258   : > { %1578 = vrot.lane.b32.xlu1 %v3774_v49, %s3447_s15  ;;  %s2971_s15 = sshll.u32 %s3658_s12, 3 }
 0x259   : > { %s629_s21 = scalar_lea.vmem [#allocation9], %s2971_s15 }
 0x25c   : > { %1581 = vrot.lane.b32.xlu1 %v3774_v49, %s3445_s25  ;;  %s3452_s25 = smov 24  }
 0x263   : > { %1575 = vrot.lane.b32.xlu0 %v3774_v49, %s3446_s22  ;;  %s4071_s22 = sld [smem:[#allocation23_spill]] }
 0x2aa   : > { %v1289_v55 = vpop.trf.xlu0  ;;  %v1257_v56 = vpop.trf.xlu1 }
 0x2ae   : > { %v1321_v62 = vpop.trf.xlu0  ;;  %v1353_v63 = vpop.trf.xlu1 }
 0x2af   : > { %v1497_v4 = vcombine.low %v1257_v56, %v1321_v62  ;;  %v1505_v5 = vcombine.low %v1289_v55, %v1353_v63  ;;  %v1924_v62 = vrot.slane %v1910_v52, %v3737_v44  ;;  %v1945_v63 = vpack.c.bf16 %v1941_v54, %v1941_v54 }
 0x2b1   : > { %v1504_v11 = vrot.slane %v1497_v4, %v3732_v34  ;;  %v1512_v12 = vrot.slane %v1505_v5, %v3732_v34  ;;  %v1943_v5 = vcombine.low %v1924_v62, %v1940_v2 }
 0x2b2   : > { %v1385_v6 = vpop.trf.xlu0  ;;  %v1417_v58 = vpop.trf.xlu1 }
 0x2b3   : > { %v1529_v23 = vcombine.low %v1504_v11, %v1512_v12  ;;  %v1530_v24 = vcombine.high %v1504_v11, %v1512_v12  ;;  %v1947_v10 = vpack.c.bf16 %v1943_v5, %v1943_v5 }
 0x2b5   : > { %v1537_v33 = vrot.slane %v1529_v23, %v3737_v44  ;;  %v1544_v35 = vrot.slane %v1530_v24, %v3737_v44 }
 0x2b6   : > { %v1449_v13 = vpop.trf.xlu0  ;;  %v1481_v14 = vpop.trf.xlu1 }
 0x2b7   : > { %v1513_v16 = vcombine.low %v1385_v6, %v1449_v13  ;;  %v1521_v17 = vcombine.low %v1417_v58, %v1481_v14  ;;  %v1944_v6 = vcombine.high %v1924_v62, %v1940_v2 }
 0x2b9   : > { %v1520_v25 = vrot.slane %v1513_v16, %v3732_v34  ;;  %v1528_v26 = vrot.slane %v1521_v17, %v3732_v34  ;;  %v1948_v11 = vpack.c.bf16 %v1944_v6, %v1944_v6 }
 0x2bb   : > { %v1545_v27 = vcombine.low %v1520_v25, %v1528_v26  ;;  %v1546_v28 = vcombine.high %v1520_v25, %v1528_v26 }
 0x2bd   : > { %v1553_v36 = vrot.slane %v1545_v27, %v3737_v44  ;;  %v1560_v37 = vrot.slane %v1546_v28, %v3737_v44 }
 0x2bf   : > { %v1561_v38 = vcombine.low %v1537_v33, %v1553_v36  ;;  %v1562_v39 = vcombine.high %v1537_v33, %v1553_v36  ;;  %v1563_v40 = vcombine.low %v1544_v35, %v1560_v37  ;;  %v1564_v41 = vcombine.high %v1544_v35, %v1560_v37 }
 0x2c1   : > { %v1565_v45 = vpack.c.bf16 %v1561_v38, %v1561_v38  ;;  %v1566_v46 = vpack.c.bf16 %v1562_v39, %v1562_v39  ;;  %v1567_v47 = vpack.c.bf16 %v1563_v40, %v1563_v40  ;;  %v1568_v48 = vpack.c.bf16 %v1564_v41, %v1564_v41 }
 0x2c3   : > { %1570 = vst.msk [vmem:[#allocation2] sm:$0xf] %vm1569_vm2, %v1565_v45  ;;  %1571 = vst.msk [vmem:[#allocation2 + $0x4] sm:$0xf] %vm1569_vm2, %v1566_v46 }
 0x2c4   : > { %1572 = vst.msk [vmem:[#allocation2 + $0x8] sm:$0xf] %vm1569_vm2, %v1567_v47  ;;  %1573 = vst.msk [vmem:[#allocation2 + $0xc] sm:$0xf] %vm1569_vm2, %v1568_v48 }
 0x2ca   : > { %v1949_v55 = vld [vmem:[#allocation2] sm:$0xf]  ;;  %v1950_v56 = vld [vmem:[#allocation2 + $0x4] sm:$0xf]  ;;  %v1579_v3 = vpop.permute.xlu1 %1578 }
 0x2cb   : > { %v1966_v57 = vsel %vm1964_vm3, %v1949_v55, 0  ;;  %v2012_v59 = vsel %vm1964_vm3, %v1950_v56, 0  ;;  %v1951_v60 = vld [vmem:[#allocation2 + $0x8] sm:$0xf]  ;;  %v1952_v61 = vld [vmem:[#allocation2 + $0xc] sm:$0xf]  ;;  %v1584_v58 = vcombine.low %v3774_v49, %v1579_v3  ;;  %v1585_v7 = vcombine.high %v3774_v49, %v1579_v3 }
 0x2cc   : > { %3090 = vmatpush3.bf16.msra.mxu1 %v1966_v57  ;;  %3096 = vmatpush3.bf16.msra.mxu0 %v2012_v59  ;;  %v2058_v21 = vsel %vm1964_vm3, %v1951_v60, 0  ;;  %v2104_v4 = vsel %vm1964_vm3, %v1952_v61, 0  ;;  %v2989_v57 = vld [vmem:[%s570_s17] ss:$0 sm:$0xff]  ;;  %s4073_s17 = sld [smem:[#allocation25_spill]] }
 0x2cd   : > { %3101 = vmatprep.subr.bf16.mxu1 %v3443_v0  ;;  %3107 = vmatprep.subr.bf16.mxu0 %v3443_v0  ;;  %v1592_v14 = vrot.slane %v1584_v58, %v3732_v34  ;;  %v1599_v16 = vrot.slane %v1585_v7, %v3732_v34 }
 0x2ce   : > { %v1582_v8 = vpop.permute.xlu1 %1581 }
 0x2cf   : > { %3092 = vmatmul.mubr.msk.bf16.vlgmr.msra.gmra.mxu1 %vm1960_vm4, %v1945_v63  ;;  %3098 = vmatmul.mubr.msk.bf16.vlgmr.msra.gmra.mxu0 %vm1960_vm4, %v1946_v1 }
 0x2d0   : > { %3102 = vmatpush3.bf16.msra.mxu1 %v2058_v21  ;;  %3108 = vmatpush3.bf16.msra.mxu0 %v2104_v4 }
 0x2d1   : > { %3103 = vmatprep.mubr.msk.bf16.mxu1 %vm3444_vm0, %v3443_v0  ;;  %3109 = vmatprep.mubr.msk.bf16.mxu0 %vm3444_vm0, %v3443_v0 }
 0x2d2   : > { %3113 = vmatprep.subr.bf16.mxu1 %v3443_v0  ;;  %3119 = vmatprep.subr.bf16.mxu0 %v3443_v0 }
 0x2d5   : > { %v1576_v9 = vpop.permute.xlu0 %1575 }
 0x2d6   : > { %v1600_v12 = vcombine.low %v1576_v9, %v1582_v8  ;;  %v1601_v13 = vcombine.high %v1576_v9, %v1582_v8 }
 0x2d7   : > { %3104 = vmatmul.mubr.msk.bf16.vlgmr.msra.gmra.mxu1 %vm1960_vm4, %v1947_v10  ;;  %3110 = vmatmul.mubr.msk.bf16.vlgmr.msra.gmra.mxu0 %vm1960_vm4, %v1948_v11 }
 0x2d8   : > { %v1608_v17 = vrot.slane %v1600_v12, %v3732_v34  ;;  %v1615_v18 = vrot.slane %v1601_v13, %v3732_v34  ;;  %3115 = vmatprep.mubr.msk.bf16.mxu1 %vm3444_vm0, %v3443_v0  ;;  %3121 = vmatprep.mubr.msk.bf16.mxu0 %vm3444_vm0, %v3443_v0 }
 0x2da   : > { %v1616_v49 = vcombine.low %v1592_v14, %v1608_v17  ;;  %v1617_v19 = vcombine.high %v1592_v14, %v1608_v17  ;;  %v1632_v20 = vcombine.low %v1599_v16, %v1615_v18  ;;  %v1633_v22 = vcombine.high %v1599_v16, %v1615_v18 }
 0x2dc   : > { %v1624_v23 = vrot.slane %v1616_v49, %v3737_v44  ;;  %v1631_v24 = vrot.slane %v1617_v19, %v3737_v44  ;;  %v1640_v25 = vrot.slane %v1632_v20, %v3737_v44  ;;  %v1647_v26 = vrot.slane %v1633_v22, %v3737_v44 }
 0x2de   : > { %v1652_v27 = vcombine.low %v1624_v23, %v1631_v24  ;;  %v2981_v28 = vcombine.high %v1624_v23, %v1631_v24  ;;  %v1668_v29 = vcombine.low %v1640_v25, %v1647_v26  ;;  %v2982_v30 = vcombine.high %v1640_v25, %v1647_v26 }
 0x2e0   : > { %v1659_v31 = vrot.slane %v1652_v27, %v3732_v34  ;;  %v1667_v32 = vrot.slane %v2981_v28, %v3732_v34  ;;  %v1675_v33 = vrot.slane %v1668_v29, %v3732_v34  ;;  %v1683_v35 = vrot.slane %v2982_v30, %v3732_v34 }
 0x2e2   : > { %v1684_v36 = vcombine.low %v1659_v31, %v1667_v32  ;;  %v1685_v37 = vcombine.high %v1659_v31, %v1667_v32  ;;  %v1700_v38 = vcombine.low %v1675_v33, %v1683_v35  ;;  %v1701_v39 = vcombine.high %v1675_v33, %v1683_v35 }
 0x2e4   : > { %v1692_v40 = vrot.slane %v1684_v36, %v3737_v44  ;;  %v1699_v41 = vrot.slane %v1685_v37, %v3737_v44  ;;  %v1708_v42 = vrot.slane %v1700_v38, %v3737_v44  ;;  %v1715_v43 = vrot.slane %v1701_v39, %v3737_v44 }
 0x2e6   : > { %v1716_v45 = vcombine.low %v1692_v40, %v1708_v42  ;;  %v1717_v46 = vcombine.high %v1692_v40, %v1708_v42  ;;  %v1718_v47 = vcombine.low %v1699_v41, %v1715_v43  ;;  %v1719_v48 = vcombine.high %v1699_v41, %v1715_v43 }
 0x2e8   : > { %v1720_v50 = vpack.c.bf16 %v1716_v45, %v1716_v45  ;;  %v1721_v51 = vpack.c.bf16 %v1717_v46, %v1717_v46  ;;  %v1722_v52 = vpack.c.bf16 %v1718_v47, %v1718_v47  ;;  %v1723_v53 = vpack.c.bf16 %v1719_v48, %v1719_v48 }
 0x2ea   : > { %1724 = vst.msk [vmem:[#allocation3] sm:$0xf] %vm1569_vm2, %v1720_v50  ;;  %1725 = vst.msk [vmem:[#allocation3 + $0x4] sm:$0xf] %vm1569_vm2, %v1721_v51 }
 0x2eb   : > { %1726 = vst.msk [vmem:[#allocation3 + $0x8] sm:$0xf] %vm1569_vm2, %v1722_v52  ;;  %1727 = vst.msk [vmem:[#allocation3 + $0xc] sm:$0xf] %vm1569_vm2, %v1723_v53 }
 0x2f1   : > { %v2186_v54 = vld [vmem:[#allocation3] sm:$0xf]  ;;  %v2187_v15 = vld [vmem:[#allocation3 + $0x4] sm:$0xf] }
 0x2f2   : > { %v2194_v55 = vsel %vm1964_vm3, %v2186_v54, 0  ;;  %v2240_v56 = vsel %vm1964_vm3, %v2187_v15, 0  ;;  %v2188_v32 = vld [vmem:[#allocation3 + $0x8] sm:$0xf]  ;;  %v2189_v37 = vld [vmem:[#allocation3 + $0xc] sm:$0xf] }
 0x2f3   : > { %3114 = vmatpush3.bf16.msra.mxu1 %v2194_v55  ;;  %3120 = vmatpush3.bf16.msra.mxu0 %v2240_v56  ;;  %v2286_v40 = vsel %vm1964_vm3, %v2188_v32, 0  ;;  %v2332_v41 = vsel %vm1964_vm3, %v2189_v37, 0 }
 0x2f4   : > { %3125 = vmatprep.subr.bf16.mxu1 %v3443_v0  ;;  %3131 = vmatprep.subr.bf16.mxu0 %v3443_v0 }
 0x38f   : > { %v2002_v59 = vpop.f32.mrf.mxu1  ;;  %v2048_v60 = vpop.f32.mrf.mxu0 }
 0x390   : > { %v2003_v61 = vadd.f32 %v2989_v57, %v2002_v59  ;;  %v2049_v62 = vadd.f32 %v2989_v57, %v2048_v60 }
 0x391   : > { %v3093_v63 = vpop.f32.mrf.mxu1  ;;  %v3099_v1 = vpop.f32.mrf.mxu0 }
 0x392   : > { %v2146_v2 = vsel %vm1960_vm4, %v2003_v61, -inf  ;;  %v2149_v3 = vsel %vm1960_vm4, %v2049_v62, -inf }
 0x393   : > { %2147 = vmax.xlane.f32.xlu1 %v2146_v2  ;;  %v2005_v21 = vpop.f32.mrf.mxu1  ;;  %2150 = vmax.xlane.f32.xlu0 %v2149_v3  ;;  %v2051_v4 = vpop.f32.mrf.mxu0 }
 0x395   : > { %v3094_v5 = vpop.f32.mrf.mxu1  ;;  %v3100_v6 = vpop.f32.mrf.mxu0 }
 0x397   : > { %v2094_v58 = vpop.f32.mrf.mxu1  ;;  %v2140_v7 = vpop.f32.mrf.mxu0 }
 0x398   : > { %v2095_v8 = vadd.f32 %v2989_v57, %v2094_v58  ;;  %v2141_v9 = vadd.f32 %v2989_v57, %v2140_v7 }
 0x399   : > { %v3105_v10 = vpop.f32.mrf.mxu1  ;;  %v3111_v11 = vpop.f32.mrf.mxu0 }
 0x39a   : > { %v2152_v12 = vsel %vm1960_vm4, %v2095_v8, -inf  ;;  %v2155_v13 = vsel %vm1960_vm4, %v2141_v9, -inf }
 0x39b   : > { %v2097_v14 = vpop.f32.mrf.mxu1  ;;  %2153 = vmax.xlane.f32.xlu0 %v2152_v12  ;;  %2156 = vmax.xlane.f32.xlu1 %v2155_v13  ;;  %v2143_v16 = vpop.f32.mrf.mxu0 }
 0x39d   : > { %v3106_v17 = vpop.f32.mrf.mxu1  ;;  %v3112_v18 = vpop.f32.mrf.mxu0 }
 0x41c   : > { %v2148_v49 = vpop.xlane.xlu1 %2147  ;;  %v2151_v19 = vpop.xlane.xlu0 %2150 }
 0x41d   : > { %v2158_v20 = vsub.f32 %v2003_v61, %v2148_v49  ;;  %v2159_v22 = vsub.f32 %v2049_v62, %v2151_v19 }
 0x41f   : > { %v2162_v23 = vmul.f32 1.442695, %v2158_v20  ;;  %v2164_v24 = vmul.f32 1.442695, %v2159_v22 }
 0x421   : > { %3276 = vpow2.f32 %v2162_v23 }
 0x422   : > { %3278 = vpow2.f32 %v2164_v24 }
 0x424   : > { %v2154_v25 = vpop.xlane.xlu0 %2153  ;;  %v2157_v26 = vpop.xlane.xlu1 %2156 }
 0x425   : > { %v2160_v27 = vsub.f32 %v2095_v8, %v2154_v25  ;;  %v2161_v28 = vsub.f32 %v2141_v9, %v2157_v26  ;;  %v3264_v26 = vld [vmem:[%s4023_s8 + $0x8] sm:$0xff]  }
 0x427   : > { %v2166_v29 = vmul.f32 1.442695, %v2160_v27  ;;  %v2168_v30 = vmul.f32 1.442695, %v2161_v28 }
 0x429   : > { %3280 = vpow2.f32 %v2166_v29 }
 0x42a   : > { %3282 = vpow2.f32 %v2168_v30 }
 0x42e   : > { %v3277_v31 = vpop.eup %3276 }
 0x42f   : > { %v3279_v33 = vpop.eup %3278  ;;  %v2170_v35 = vsel %vm1960_vm4, %v3277_v31, 0.0  ;;  %v2182_v36 = vpack.c.bf16 %v3277_v31, %v3277_v31 }
 0x430   : > { %2171 = vadd.xlane.f32.xlu0 %v2170_v35  ;;  %v2173_v38 = vsel %vm1960_vm4, %v3279_v33, 0.0  ;;  %v2183_v39 = vpack.c.bf16 %v3279_v33, %v3279_v33 }
 0x431   : > { %2174 = vadd.xlane.f32.xlu1 %v2173_v38  ;;  %3116 = vmatmul.mubr.msk.bf16.vlgmr.msra.gmra.mxu1 %vm1960_vm4, %v2182_v36  ;;  %v3265_v36 = vld [vmem:[%s4023_s8] sm:$0xff]  }
 0x432   : > { %3122 = vmatmul.mubr.msk.bf16.vlgmr.msra.gmra.mxu0 %vm1960_vm4, %v2183_v39  ;;  %3126 = vmatpush3.bf16.msra.mxu1 %v2286_v40 }
 0x433   : > { %3132 = vmatpush3.bf16.msra.mxu0 %v2332_v41  ;;  %3127 = vmatprep.mubr.msk.bf16.mxu1 %vm3444_vm0, %v3443_v0 }
 0x434   : > { %3133 = vmatprep.mubr.msk.bf16.mxu0 %vm3444_vm0, %v3443_v0  ;;  %3137 = vmatprep.subr.bf16.mxu1 %v3443_v0 }
 0x435   : > { %3145 = vmatprep.subr.bf16.mxu0 %v3443_v0 }
 0x436   : > { %v3281_v42 = vpop.eup %3280 }
 0x437   : > { %v3283_v43 = vpop.eup %3282  ;;  %v2176_v45 = vsel %vm1960_vm4, %v3281_v42, 0.0  ;;  %v2184_v46 = vpack.c.bf16 %v3281_v42, %v3281_v42 }
 0x438   : > { %2177 = vadd.xlane.f32.xlu0 %v2176_v45  ;;  %v2179_v47 = vsel %vm1960_vm4, %v3283_v43, 0.0  ;;  %v2185_v48 = vpack.c.bf16 %v3283_v43, %v3283_v43 }
 0x439   : > { %2180 = vadd.xlane.f32.xlu1 %v2179_v47  ;;  %3128 = vmatmul.mubr.msk.bf16.vlgmr.msra.gmra.mxu1 %vm1960_vm4, %v2184_v46 }
 0x43a   : > { %3134 = vmatmul.mubr.msk.bf16.vlgmr.msra.gmra.mxu0 %vm1960_vm4, %v2185_v48  ;;  %3141 = vmatprep.mubr.msk.bf16.mxu1 %vm3444_vm0, %v3443_v0 }
 0x43b   : > { %3149 = vmatprep.mubr.msk.bf16.mxu0 %vm3444_vm0, %v3443_v0  ;;  %3138 = vmatpush3.bf16.msra.mxu1 %v3264_v26  ;;  %v3272_v26 = vld [vmem:[%s4029_s14 + $0x18] sm:$0xff]  }
 0x43c   : > { %3139 = vmatprep.subr.bf16.mxu1 %v3443_v0 }
 0x43f   : > { %3140 = vmatpush3.bf16.msra.mxu1 %v3265_v36 }
 0x440   : > { %3153 = vmatprep.subr.bf16.mxu1 %v3443_v0 }
 0x4b9   : > { %v2172_v50 = vpop.xlane.xlu0 %2171 }
 0x4ba   : > { %v2175_v51 = vpop.xlane.xlu1 %2174  ;;  %3284 = vrcp.f32 %v2172_v50 }
 0x4bb   : > { %3286 = vrcp.f32 %v2175_v51 }
 0x4c1   : > { %v2178_v52 = vpop.xlane.xlu0 %2177 }
 0x4c2   : > { %v2181_v53 = vpop.xlane.xlu1 %2180  ;;  %3288 = vrcp.f32 %v2178_v52 }
 0x4c3   : > { %3290 = vrcp.f32 %v2181_v53 }
 0x4c7   : > { %v3285_v60 = vpop.eup %3284 }
 0x4c8   : > { %v3287_v62 = vpop.eup %3286 }
 0x4cf   : > { %v3289_v1 = vpop.eup %3288 }
 0x4d0   : > { %v3291_v3 = vpop.eup %3290 }
 0x4f1   : > { %v2230_v54 = vpop.f32.mrf.mxu1 }
 0x4f2   : > { %v2276_v15 = vpop.f32.mrf.mxu0  ;;  %v2378_v21 = vmul.f32 %v3285_v60, %v2230_v54  ;;  %v3000_v60 = vld [vmem:[%s4024_s9] ss:$0 sm:$0xff] }
 0x4f3   : > { %v3117_v55 = vpop.f32.mrf.mxu1  ;;  %v2379_v6 = vmul.f32 %v3287_v62, %v2276_v15 }
 0x4f4   : > { %v3123_v56 = vpop.f32.mrf.mxu0 }
 0x4f5   : > { %v2233_v57 = vpop.f32.mrf.mxu1 }
 0x4f6   : > { %v2279_v59 = vpop.f32.mrf.mxu0 }
 0x4f7   : > { %v3118_v61 = vpop.f32.mrf.mxu1 }
 0x4f8   : > { %v3124_v63 = vpop.f32.mrf.mxu0 }
 0x4f9   : > { %v2322_v2 = vpop.f32.mrf.mxu1 }
 0x4fa   : > { %v2380_v4 = vmul.f32 %v3289_v1, %v2322_v2  ;;  %v2368_v5 = vpop.f32.mrf.mxu0  ;;  %v3298_v1 = vld [vmem:[%s3681_s20] sm:$0xff] }
 0x4fb   : > { %v2381_v58 = vmul.f32 %v3291_v3, %v2368_v5  ;;  %v3129_v7 = vpop.f32.mrf.mxu1 }
 0x4fc   : > { %v2382_v8 = vcombine.low %v2378_v21, %v2380_v4  ;;  %v2383_v9 = vcombine.high %v2378_v21, %v2380_v4  ;;  %v3135_v10 = vpop.f32.mrf.mxu0 }
 0x4fd   : > { %v2398_v11 = vcombine.low %v2379_v6, %v2381_v58  ;;  %v2399_v12 = vcombine.high %v2379_v6, %v2381_v58  ;;  %v2325_v13 = vpop.f32.mrf.mxu1  ;;  %v3267_v10 = vld [vmem:[#allocation7] sm:$0xff]  }
 0x4fe   : > { %v2390_v14 = vrot.slane %v2382_v8, %v3732_v34  ;;  %v2397_v16 = vrot.slane %v2383_v9, %v3732_v34  ;;  %v2371_v17 = vpop.f32.mrf.mxu0  ;;  %v3266_v9 = vld [vmem:[#allocation7 + $0x8] sm:$0xff]  }
 0x4ff   : > { %v2406_v18 = vrot.slane %v2398_v11, %v3732_v34  ;;  %v2413_v49 = vrot.slane %v2399_v12, %v3732_v34  ;;  %v3130_v19 = vpop.f32.mrf.mxu1  ;;  %3146 = vmatpush3.bf16.msra.mxu0 %v3266_v9  ;;  %v3268_v11 = vld [vmem:[%s4029_s14 + $0x38] sm:$0xff]   ;;  %v3269_v12 = vld [vmem:[%s4029_s14 + $0x30] sm:$0xff]  }
 0x500   : > { %v3136_v20 = vpop.f32.mrf.mxu0  ;;  %3147 = vmatprep.subr.bf16.mxu0 %v3443_v0  ;;  %v3005_v19 = vld [vmem:[%s4069_s24] ss:$0 sm:$0xff]  ;;  %s2863_s24 = sshll.u32 %s629_s21, 4  ;;  %s2864_s24 = int_to_ptr.vmem [resolvable:$true] %s2863_s24 }
 0x501   : > { %v2414_v22 = vcombine.low %v2390_v14, %v2406_v18  ;;  %v2415_v23 = vcombine.high %v2390_v14, %v2406_v18  ;;  %v2430_v24 = vcombine.low %v2397_v16, %v2413_v49  ;;  %v2431_v25 = vcombine.high %v2397_v16, %v2413_v49  ;;  %v3004_v18 = vld [vmem:[%s4025_s10] ss:$0 sm:$0xff]  ;;  %s3353_s20 = scalar_lea.vmem %s2864_s24, 128 }
 0x502   : > { %p3354_p1 = scmp.ne.s32.totalorder %s2864_s24, %s3353_s20 }
 0x503   : > { %v2422_v27 = vrot.slane %v2414_v22, %v3737_v44  ;;  %v2429_v28 = vrot.slane %v2415_v23, %v3737_v44  ;;  %v2438_v29 = vrot.slane %v2430_v24, %v3737_v44  ;;  %v2445_v30 = vrot.slane %v2431_v25, %v3737_v44  ;;  %3148 = vmatpush3.bf16.msra.mxu0 %v3267_v10  ;;  %v3270_v24 = vld [vmem:[%s4029_s14 + $0x28] sm:$0xff]   ;;  %v3271_v25 = vld [vmem:[%s4029_s14 + $0x20] sm:$0xff]  }
 0x504   : > { %p3355_p10 = pnand %p3354_p1, %p3632_p12 }
 0x505   : > { %v2450_v31 = vcombine.low %v2422_v27, %v2429_v28  ;;  %v2998_v32 = vcombine.high %v2422_v27, %v2429_v28  ;;  %v2466_v33 = vcombine.low %v2438_v29, %v2445_v30  ;;  %v2999_v35 = vcombine.high %v2438_v29, %v2445_v30  ;;  %v3273_v27 = vld [vmem:[%s4029_s14 + $0x10] sm:$0xff]   ;;  %v3274_v28 = vld [vmem:[%s4029_s14 + $0x8] sm:$0xff]   ;;  %v3275_v29 = vld [vmem:[%s4029_s14] sm:$0xff]  }
 0x506   : > { %p3356_p3 = pneg %p3355_p10 }
 0x507   : > { %v2457_v37 = vrot.slane %v2450_v31, %v3732_v34  ;;  %v2465_v38 = vrot.slane %v2998_v32, %v3732_v34  ;;  %v2473_v39 = vrot.slane %v2466_v33, %v3732_v34  ;;  %v2481_v40 = vrot.slane %v2999_v35, %v3732_v34 }
 0x509   : > { %v2483_v41 = vcombine.high %v2457_v37, %v2465_v38  ;;  %v2499_v42 = vcombine.high %v2473_v39, %v2481_v40  ;;  %v2482_v43 = vcombine.low %v2457_v37, %v2465_v38  ;;  %v2498_v45 = vcombine.low %v2473_v39, %v2481_v40 }
 0x50b   : > { %v2497_v46 = vrot.slane %v2483_v41, %v3737_v44  ;;  %v2513_v47 = vrot.slane %v2499_v42, %v3737_v44  ;;  %v2490_v48 = vrot.slane %v2482_v43, %v3737_v44  ;;  %v2506_v50 = vrot.slane %v2498_v45, %v3737_v44  ;;  %v3010_v42 = vld [vmem:[%s4071_s22] ss:$0 sm:$0xff] }
 0x50d   : > { %v2516_v51 = vcombine.low %v2497_v46, %v2513_v47  ;;  %v2515_v52 = vcombine.high %v2490_v48, %v2506_v50  ;;  %v2514_v53 = vcombine.low %v2490_v48, %v2506_v50  ;;  %v2517_v34 = vcombine.high %v2497_v46, %v2513_v47 }
 0x50f   : > { %2523 = vrot.lane.b32.xlu1 %v2516_v51, %s3450_s27  ;;  %2519 = vrot.lane.b32.xlu0 %v2515_v52, %s3451_s26  ;;  %s4070_s27 = sld [smem:[#allocation22_spill]] }
 0x513   : > { %2527 = vrot.lane.b32.xlu1 %v2517_v34, %s3452_s25  ;;  %s4074_s25 = sld [smem:[#allocation26_spill]] }
 0x515   : > { %v3006_v30 = vld [vmem:[%s4070_s27] ss:$0 sm:$0xff] }
 0x519   : > { %s2861_s22 = scalar_lea.hbm %s4074_s25, %s3022_s0 }
 0x581   : > { %v2524_v54 = vpop.permute.xlu1 %2523  ;;  %v2520_v15 = vpop.permute.xlu0 %2519 }
 0x582   : > { %v2530_v55 = vsel %vm1960_vm4, %v2514_v53, %v2520_v15 }
 0x583   : > { %v2532_v57 = vsel %vm2531_vm5, %v2530_v55, %v2524_v54 }
 0x585   : > { %v2528_v56 = vpop.permute.xlu1 %2527 }
 0x586   : > { %v2534_v44 = vsel %vm2533_vm6, %v2532_v57, %v2528_v56 }
 0x587   : > { %v2535_v59 = vpack.c.bf16 %v2534_v44, %v2534_v44 }
 0x589   : > { %3142 = vmatmul.mubr.msk.bf16.vlgmr.msra.gmra.mxu1 %vm664_vm1, %v2535_v59  ;;  %v3019_v59 = vld [vmem:[%s4072_s18] ss:$0 sm:$0xff]  ;;  %s3357_s18 = sshll.u32 %s3453_s23, 4  ;;  %s3358_s18 = int_to_ptr.vmem [resolvable:$false] %s3357_s18 }
 0x58a   : > { %3169 = vmatprep.mubr.msk.bf16.mxu1 %vm3444_vm0, %v3443_v0  ;;  %3154 = vmatpush3.bf16.msra.mxu1 %v3268_v11  ;;  %s3359_s30 = scalar_lea.vmem %s3358_s18, 256  ;;  %p3360_p11 = scmp.lt.s32.totalorder %s2864_s24, %s3358_s18 }
 0x58b   : > { %3155 = vmatprep.subr.bf16.mxu1 %v3443_v0  ;;  %p3361_p2 = scmp.lt.s32.totalorder %s3359_s30, %s3353_s20 }
 0x58d   : > { %p3362_p5 = por %p3361_p2, %p3360_p11 }
 0x58e   : > { %3156 = vmatpush3.bf16.msra.mxu1 %v3269_v12 }
 0x58f   : > { %3157 = vmatprep.subr.bf16.mxu1 %v3443_v0  ;;  %p3363_p7 = pnand %p3362_p5, %p3356_p3 }
 0x592   : > { %3158 = vmatpush3.bf16.msra.mxu1 %v3270_v24 }
 0x593   : > { %3159 = vmatprep.subr.bf16.mxu1 %v3443_v0 }
 0x596   : > { %3160 = vmatpush3.bf16.msra.mxu1 %v3271_v25 }
 0x597   : > { %3161 = vmatprep.subr.bf16.mxu1 %v3443_v0 }
 0x59a   : > { %3162 = vmatpush3.bf16.msra.mxu1 %v3272_v26 }
 0x59b   : > { %3163 = vmatprep.subr.bf16.mxu1 %v3443_v0 }
 0x59e   : > { %3164 = vmatpush3.bf16.msra.mxu1 %v3273_v27 }
 0x59f   : > { %3165 = vmatprep.subr.bf16.mxu1 %v3443_v0 }
 0x5a2   : > { %3166 = vmatpush3.bf16.msra.mxu1 %v3274_v28 }
 0x5a3   : > { %3167 = vmatprep.subr.bf16.mxu1 %v3443_v0 }
 0x5a6   : > { %3168 = vmatpush3.bf16.msra.mxu1 %v3275_v29 }
 0x649   : > { %v2596_v61 = vpop.f32.mrf.mxu1 }
 0x64a   : > { %v2597_v62 = vadd.f32 %v3000_v60, %v2596_v61  ;;  %v3020_v61 = vld [vmem:[%s4073_s17] ss:$0 sm:$0xff] }
 0x64b   : > { %v3143_v63 = vpop.f32.mrf.mxu1 }
 0x64c   : > { %v2602_v2 = vadd.f32 %v3298_v1, %v2597_v62 }
 0x64d   : > { %v2599_v3 = vpop.f32.mrf.mxu1 }
 0x64e   : > { %v2605_v21 = vsel %vm664_vm1, %v2602_v2, 0.0 }
 0x64f   : > { %2606 = vadd.xlane.f32.xlu0 %v2605_v21  ;;  %v3144_v4 = vpop.f32.mrf.mxu1 }
 0x6d8   : > { %v2607_v5 = vpop.xlane.xlu0 %2606 }
 0x6d9   : > { %v2609_v6 = vmul.f32 0.03125, %v2607_v5 }
 0x6db   : > { %v2610_v58 = vsub.f32 %v2602_v2, %v2609_v6 }
 0x6dd   : > { %v2611_v7 = vmul.f32 %v2610_v58, %v2610_v58 }
 0x6df   : > { %v2612_v8 = vsel %vm664_vm1, %v2611_v7, 0.0 }
 0x6e0   : > { %2613 = vadd.xlane.f32.xlu1 %v2612_v8 }
 0x769   : > { %v2614_v13 = vpop.xlane.xlu1 %2613 }
 0x76a   : > { %v2615_v14 = vmul.f32 0.03125, %v2614_v13 }
 0x76c   : > { %v2616_v16 = vadd.f32 1e-12, %v2615_v14 }
 0x76e   : > { %3292 = vrsqrt.f32 %v2616_v16 }
 0x77b   : > { %v3293_v17 = vpop.eup %3292 }
 0x77c   : > { %v2618_v49 = vmul.f32 %v3293_v17, %v2610_v58 }
 0x77e   : > { %v2625_v20 = vmul.f32 %v3004_v18, %v2618_v49 }
 0x780   : > { %v2632_v22 = vadd.f32 %v3005_v19, %v2625_v20 }
 0x782   : > { %v2633_v23 = vpack.c.bf16 %v2632_v22, %v2632_v22 }
 0x784   : > { %3150 = vmatmul.mubr.msk.bf16.vlgmr.msra.gmra.mxu0 %vm664_vm1, %v2633_v23 }
 0x844   : > { %v2694_v31 = vpop.f32.mrf.mxu0 }
 0x845   : > { %v2695_v32 = vadd.f32 %v3006_v30, %v2694_v31 }
 0x846   : > { %v3151_v33 = vpop.f32.mrf.mxu0 }
 0x847   : > { %v2701_v35 = vmul.f32 0.70710677, %v2695_v32  ;;  %v2700_v39 = vmul.f32 0.5, %v2695_v32 }
 0x848   : > { %v2697_v36 = vpop.f32.mrf.mxu0 }
 0x849   : > { %3294 = verf.f32 %v2701_v35 }
 0x84a   : > { %v3152_v37 = vpop.f32.mrf.mxu0 }
 0x856   : > { %v3295_v38 = vpop.eup %3294 }
 0x857   : > { %v2703_v40 = vadd.f32 1.0, %v3295_v38 }
 0x859   : > { %v2704_v0 = vmul.f32 %v2703_v40, %v2700_v39 }
 0x85b   : > { %v2705_v41 = vpack.c.bf16 %v2704_v0, %v2704_v0 }
 0x85d   : > { %3170 = vmatmul.mubr.bf16.vlgmr.msra.gmra.mxu1 %v2705_v41 }
 0x91d   : > { %v2811_v43 = vpop.f32.mrf.mxu1 }
 0x91e   : > { %v2812_v45 = vadd.f32 %v3010_v42, %v2811_v43 }
 0x91f   : > { %v3171_v46 = vpop.f32.mrf.mxu1 }
 0x920   : > { %v2817_v47 = vadd.f32 %v2812_v45, %v2632_v22 }
 0x921   : > { %v2814_v48 = vpop.f32.mrf.mxu1 }
 0x922   : > { %v2820_v50 = vsel %vm664_vm1, %v2817_v47, 0.0 }
 0x923   : > { %2821 = vadd.xlane.f32.xlu0 %v2820_v50  ;;  %v3172_v51 = vpop.f32.mrf.mxu1 }
 0x9ac   : > { %v2822_v52 = vpop.xlane.xlu0 %2821 }
 0x9ad   : > { %v2823_v53 = vmul.f32 0.03125, %v2822_v52 }
 0x9af   : > { %v2824_v34 = vsub.f32 %v2817_v47, %v2823_v53 }
 0x9b1   : > { %v2825_v54 = vmul.f32 %v2824_v34, %v2824_v34 }
 0x9b3   : > { %v2826_v15 = vsel %vm664_vm1, %v2825_v54, 0.0 }
 0x9b4   : > { %2827 = vadd.xlane.f32.xlu0 %v2826_v15 }
 0xa3d   : > { %v2828_v55 = vpop.xlane.xlu0 %2827 }
 0xa3e   : > { %v2829_v56 = vmul.f32 0.03125, %v2828_v55 }
 0xa40   : > { %v2830_v57 = vadd.f32 1e-12, %v2829_v56 }
 0xa42   : > { %3296 = vrsqrt.f32 %v2830_v57 }
 0xa4f   : > { %v3297_v44 = vpop.eup %3296 }
 0xa50   : > { %v2832_v60 = vmul.f32 %v3297_v44, %v2824_v34 }
 0xa52   : > { %v2839_v62 = vmul.f32 %v3019_v59, %v2832_v60 }
 0xa54   : > { %v2846_v63 = vadd.f32 %v3020_v61, %v2839_v62 }
 0xa56   : > { %2847 = vst.msk [vmem:[%s629_s21] sm:$0xff] %vm664_vm1, %v2846_v63 }
 0xa57   : > { %3366 = shalt.err (!%p3363_p7)
}
 0xa58   : > { %s3367_s15 = scalar_lea.hbm %s2861_s22, 128  ;;  %s3371_s11 = scalar_lea.hbm %s4074_s25, 256 }
 0xa59   : > { %p3368_p6 = scmp.ne.s32.totalorder %s2861_s22, %s3367_s15  ;;  %p3372_p0 = scmp.lt.s32.totalorder %s2861_s22, %s4074_s25 }
 0xa5a   : > { %p3373_p13 = scmp.lt.s32.totalorder %s3371_s11, %s3367_s15 }
 0xa5b   : > { %p3369_p4 = pnand %p3368_p6, %p3632_p12 }
 0xa5c   : > { %p3374_p8 = por %p3373_p13, %p3372_p0 }
 0xa5d   : > { %p3370_p9 = pneg %p3369_p4 }
 0xa5f   : > { %p3375_p1 = pnand %p3374_p8, %p3370_p9 }
 0xa61   : > { %3378 = shalt.err (!%p3375_p1)
}
 0xa62   : > { %3179 = dma.vmem_to_hbm [thread:$0]  (%p3632_p12), %s2864_s24, 128, %s2861_s22, %s2849_s2  }
 0xa63 PF: > { %s4075_s21 = sld [smem:[#allocation13_spill]]  ;;  %p4078_p3 = scmp.ge.s32.totalorder %s3437_s19, 2 }
 0xa64   : > { %s4076_s27 = sld [smem:[#allocation15_spill]] }
 0xa69   : > { %s2875_s26 = sand.u32 1, %s4075_s21  }
 0xa6a   : > { %p4077_p10 = scmp.ne.s32.totalorder %s4076_s27, 0  ;;  %s2876_s20 = scalar_lea.sflag [#allocation6], %s2875_s26 }
 0xa6c   : > { %p3190_p11 = pnand %p4078_p3, %p4077_p10 }
 0xa6e   : > { %p3191_p2 = pneg %p3190_p11 }
 0xa70   : > { %3412 = dma.done.wait (%p3191_p2), %s2876_s20, 128  }
 0xa71   : > { %3414 = vsyncadd (%p3191_p2), %s2876_s20, 4294967168  ;;  %s35_s19 = sadd.s32 1, %s3437_s19   ;;  %s4079_s30 = sld [smem:[#allocation14_spill]] }
 0xa72   : > { %p32_p5 = scmp.ge.s32.totalorder %s35_s19, 4   ;;  %s4080_s0 = sld [smem:[#allocation16_spill]] }
 0xa73   : > { %s4081_s27 = smov %s3421_s28  ;;  %s4082_s28 = smov %s3425_s29 }
 0xa74   : > { %s4083_s29 = smov %s3641_s13  ;;  %34 = sbr.rel (!%p32_p5) target bundleno = 18 (0x12), region = 149 }
 0xa79   :  { %2881 = vsyncpa [#allocation5], 1 }
 0xa7a   :  { %2883 = vsyncpa [#allocation5 + $0x1], 1 }
 0xa7b   :  { %2884 = vsyncpa [#allocation8], 1 }
 0xa7c   :  { %2885 = vsyncpa [#allocation6], 1 }
 0xa7d   :  { %2887 = vsyncpa [#allocation6 + $0x1], 1 }

</bundles_post_ra>
